<compile_context>
chip_gen: v6e
topology: v6e:2x2x1
jax: 0.10.0
libtpu: 0.0.40
codegen_flags: <defaults>
</compile_context>

<pallas_src>
import numpy as np
import jax
import jax.numpy as jnp
from jax.experimental import pallas as pl
from jax.experimental.pallas import tpu as pltpu


# ----------------------------- Pallas kernel ------------------------------ #

def _lstm_kernel(gx_ref, len_ref, w_hh_ref, out_ref, h_last_ref):
    """Single invocation: in-kernel loop over T timesteps.

    gx_ref:   (T, B, 4D) precomputed x@W_ih^T + b  (VMEM resident)
    len_ref:  (B, 1) int32 sequence lengths        (VMEM resident)
    w_hh_ref: (D, 4D) recurrent weights            (VMEM resident)
    out_ref:  (T, B, D) per-step hidden outputs (zero where t >= len[b])
    h_last_ref: (B, D) final hidden state (frozen at each sequence's end)
    """
    T, B, G = gx_ref.shape
    D = w_hh_ref.shape[0]

    w_hh = w_hh_ref[...]          # (D, 4D), loaded once
    lengths = len_ref[...]        # (B, 1) int32, loaded once

    def step(t, carry):
        h_prev, c_prev = carry
        # Only the recurrent matmul remains on the serial path.
        gates = gx_ref[t] + jnp.dot(h_prev, w_hh,
                                    preferred_element_type=jnp.float32)  # (B, 4D)

        i_g = jax.nn.sigmoid(gates[:, 0:D])
        f_g = jax.nn.sigmoid(gates[:, D:2 * D])
        g_g = jnp.tanh(gates[:, 2 * D:3 * D])
        o_g = jax.nn.sigmoid(gates[:, 3 * D:4 * D])

        c_new = f_g * c_prev + i_g * g_g
        h_new = o_g * jnp.tanh(c_new)

        valid = lengths > t                       # (B, 1) bool
        # Packed-sequence semantics: padded steps freeze the state and the
        # unpacked output is zero there.
        out_ref[t] = jnp.where(valid, h_new, 0.0).astype(out_ref.dtype)
        h_next = jnp.where(valid, h_new, h_prev)
        c_next = jnp.where(valid, c_new, c_prev)
        return (h_next, c_next)

    h0 = jnp.zeros((B, D), jnp.float32)
    c0 = jnp.zeros((B, D), jnp.float32)
    (h_last, _) = jax.lax.fori_loop(0, T, step, (h0, c0), unroll=True)
    h_last_ref[...] = h_last.astype(h_last_ref.dtype)


def lstm_pallas(gates_x_tm, lengths, w_hh_t):
    """gates_x_tm: (T, B_pad, 4D) f32, lengths: (B_pad, 1) i32, w_hh_t: (D, 4D)."""
    T, B, G = gates_x_tm.shape
    D = w_hh_t.shape[0]
    grid_spec = pltpu.PrefetchScalarGridSpec(
        num_scalar_prefetch=0,
        grid=(1,),                                 # single invocation
        in_specs=[
            pl.BlockSpec((T, B, G), lambda i: (0, 0, 0)),   # precomputed x-gates
            pl.BlockSpec((B, 1), lambda i: (0, 0)),         # lengths
            pl.BlockSpec((D, G), lambda i: (0, 0)),         # W_hh^T (resident)
        ],
        out_specs=[
            pl.BlockSpec((T, B, D), lambda i: (0, 0, 0)),   # full output slab
            pl.BlockSpec((B, D), lambda i: (0, 0)),         # final hidden
        ],
    )
    return pl.pallas_call(
        _lstm_kernel,
        out_shape=(jax.ShapeDtypeStruct((T, B, D), jnp.float32),
                   jax.ShapeDtypeStruct((B, D), jnp.float32)),
        grid_spec=grid_spec,
        compiler_params=pltpu.CompilerParams(
            dimension_semantics=("arbitrary",)),   # recurrence: sequential
    )(gates_x_tm, lengths, w_hh_t)


# --------------------------- forward-pass glue ----------------------------- #

def atae_lstm_forward(params, X, X_lengths, aspect, aspect_lengths,
                      max_sent_len, T_eff):
    """Reproduces atae_LSTM.forward: returns (output, hidden, asp_emb)."""
    emb = params["embedding"]                 # (V, D)  word-embedding table
    word_emb = emb[X]                         # (B, T, D)
    # NOTE: original code indexes the *word* embedding with aspect ids too.
    asp_emb = emb[aspect]                     # (B, A, D)
    asp_emb = jnp.sum(asp_emb, axis=1) / aspect_lengths[:, None].astype(jnp.float32)

    # embedded[i, j] = cat(word_emb[i, j], asp_emb[i]) for j < X_lengths[i], else 0
    pos = jnp.arange(max_sent_len)[None, :]                              # (1, T)
    valid = (pos < X_lengths[:, None]).astype(jnp.float32)[:, :, None]   # (B, T, 1)
    cat = jnp.concatenate(
        [word_emb, jnp.broadcast_to(asp_emb[:, None, :], word_emb.shape)], axis=-1)
    embedded = cat * valid                    # (B, T, 2D)
    # TODO(synk): nn.Dropout(p=0.01) treated as inference-mode identity (no RNG drop).

    B = X.shape[0]
    D = emb.shape[1]

    # pack_padded / pad_packed: only the first max(X_lengths) steps survive.
    x_tm = jnp.transpose(embedded[:, :T_eff], (1, 0, 2))     # (T_eff, B, 2D)

    # Hoisted input projection: one big matmul instead of T tiny ones.
    bias = params["b_ih"] + params["b_hh"]                   # (4D,)
    gates_x = (x_tm.reshape(T_eff * B, 2 * D) @ params["w_ih_t"]
               + bias).reshape(T_eff, B, 4 * D)              # (T_eff, B, 4D)

    # Pad batch to a full sublane group (multiple of 8) for the kernel.
    B_pad = ((B + 7) // 8) * 8
    pad_b = B_pad - B
    gates_x_p = jnp.pad(gates_x, ((0, 0), (0, pad_b), (0, 0)))
    lengths_p = jnp.pad(X_lengths.astype(jnp.int32), (0, pad_b))[:, None]  # (B_pad,1)

    out_tm_p, h_last_p = lstm_pallas(gates_x_p, lengths_p, params["w_hh_t"])
    out_tm = out_tm_p[:, :B]                                  # (T_eff, B, D)
    h_last = h_last_p[:B]                                     # (B, D)

    output = jnp.transpose(out_tm, (1, 0, 2))                 # (B, T_eff, D)
    hidden = h_last[None, :, :]                               # (1, B, D)
    return output, hidden, asp_emb


# --------------------------- pure-JAX reference ---------------------------- #

def lstm_ref(x_tm, mask_tm, w_ih_t, w_hh_t, bias):
    D = w_hh_t.shape[0]
    B = x_tm.shape[1]

    def step(carry, inp):
        h, c = carry
        x, m = inp
        gates = x @ w_ih_t + h @ w_hh_t + bias[0]
        i = jax.nn.sigmoid(gates[:, :D])
        f = jax.nn.sigmoid(gates[:, D:2 * D])
        g = jnp.tanh(gates[:, 2 * D:3 * D])
        o = jax.nn.sigmoid(gates[:, 3 * D:])
        c_new = f * c + i * g
        h_new = o * jnp.tanh(c_new)
        h2 = m * h_new + (1.0 - m) * h
        c2 = m * c_new + (1.0 - m) * c
        return (h2, c2), m * h_new

    init = (jnp.zeros((B, D), jnp.float32), jnp.zeros((B, D), jnp.float32))
    (h, _), ys = jax.lax.scan(step, init, (x_tm, mask_tm))
    return ys, h


# ---------------------------------- main ----------------------------------- #

if __name__ == "__main__":
    B = 4            # batch_size
    D = 32           # embedding_dim
    T = 10           # max_sent_len (small)
    A = 3            # aspect token length
    V = 20           # vocab size (word embedding table)

    key = jax.random.PRNGKey(0)
    k_emb, k_wih, k_whh, k_bih, k_bhh, k_x, k_asp = jax.random.split(key, 7)

    bound = 1.0 / np.sqrt(D)
    params = {
        "embedding": jax.random.normal(k_emb, (V, D), jnp.float32) * 0.1,
        # stored transposed: (input=2D, 4D) and (hidden=D, 4D)
        "w_ih_t": jax.random.uniform(k_wih, (2 * D, 4 * D), jnp.float32,
                                     -bound, bound),
        "w_hh_t": jax.random.uniform(k_whh, (D, 4 * D), jnp.float32,
                                     -bound, bound),
        "b_ih": jax.random.uniform(k_bih, (4 * D,), jnp.float32, -bound, bound),
        "b_hh": jax.random.uniform(k_bhh, (4 * D,), jnp.float32, -bound, bound),
    }

    # pack_padded_sequence requires lengths sorted in decreasing order.
    X_lengths_np = np.array([10, 8, 5, 3], dtype=np.int32)
    aspect_lengths_np = np.array([3, 2, 1, 3], dtype=np.int32)
    T_eff = int(X_lengths_np.max())

    X = jax.random.randint(k_x, (B, T), 0, V, dtype=jnp.int32)
    aspect = jax.random.randint(k_asp, (B, A), 0, V, dtype=jnp.int32)
    X_lengths = jnp.asarray(X_lengths_np)
    aspect_lengths = jnp.asarray(aspect_lengths_np)

    output, hidden, asp_emb = atae_lstm_forward(
        params, X, X_lengths, aspect, aspect_lengths, T, T_eff)
    jax.block_until_ready((output, hidden, asp_emb))

    # Cross-check the Pallas LSTM against a pure-JAX scan reference.
    emb = params["embedding"]
    word_emb = emb[X]
    asp_ref = jnp.sum(emb[aspect], axis=1) / aspect_lengths[:, None].astype(jnp.float32)
    pos = jnp.arange(T)[None, :]
    valid = (pos < X_lengths[:, None]).astype(jnp.float32)[:, :, None]
    cat = jnp.concatenate(
        [word_emb, jnp.broadcast_to(asp_ref[:, None, :], word_emb.shape)], axis=-1)
    embedded = cat * valid
    x_tm = jnp.transpose(embedded[:, :T_eff], (1, 0, 2))
    mask_tm = jnp.transpose(valid[:, :T_eff], (1, 0, 2))
    bias = (params["b_ih"] + params["b_hh"])[None, :]
    out_ref_tm, h_ref = lstm_ref(x_tm, mask_tm, params["w_ih_t"],
                                 params["w_hh_t"], bias)
    out_ref = jnp.transpose(out_ref_tm, (1, 0, 2))

    assert output.shape == (B, T_eff, D)
    assert hidden.shape == (1, B, D)
    assert asp_emb.shape == (B, D)
    np.testing.assert_allclose(np.asarray(output), np.asarray(out_ref),
                               rtol=1e-4, atol=1e-5)
    np.testing.assert_allclose(np.asarray(hidden[0]), np.asarray(h_ref),
                               rtol=1e-4, atol=1e-5)
    np.testing.assert_allclose(np.asarray(asp_emb), np.asarray(asp_ref),
                               rtol=1e-5, atol=1e-6)

    print("KERNEL_OK")
</pallas_src>

<mosaic_0001>
module attributes {stable_mosaic.version = 11 : i64} {
  func.func @_lstm_kernel(%arg0: i32, %arg1: memref<10x8x128xf32, #tpu.memory_space<vmem>>, %arg2: memref<8x1xi32, #tpu.memory_space<vmem>>, %arg3: memref<32x128xf32, #tpu.memory_space<vmem>>, %arg4: memref<10x8x32xf32, #tpu.memory_space<vmem>>, %arg5: memref<8x32xf32, #tpu.memory_space<vmem>>) attributes {dimension_semantics = [#tpu.dimension_semantics<arbitrary>], iteration_bounds = array<i64: 1>, scalar_prefetch = 0 : i64, scratch_operands = 0 : i64, tpu.core_type = #tpu.core_type<tc>, window_params = [{pipeline_mode = #tpu.pipeline_mode<synchronous>, transform_indices = @transform_0, window_bounds = array<i64: 10, 8, 128>}, {pipeline_mode = #tpu.pipeline_mode<synchronous>, transform_indices = @transform_1, window_bounds = array<i64: 8, 1>}, {pipeline_mode = #tpu.pipeline_mode<synchronous>, transform_indices = @transform_2, window_bounds = array<i64: 32, 128>}, {pipeline_mode = #tpu.pipeline_mode<synchronous>, transform_indices = @transform_3, window_bounds = array<i64: 10, 8, 32>}, {pipeline_mode = #tpu.pipeline_mode<synchronous>, transform_indices = @transform_4, window_bounds = array<i64: 8, 32>}]} {
    %c0 = arith.constant 0 : index
    %c0_0 = arith.constant 0 : index
    %0 = vector.load %arg3[%c0, %c0_0] : memref<32x128xf32, #tpu.memory_space<vmem>>, vector<32x128xf32>
    %c0_1 = arith.constant 0 : index
    %c0_2 = arith.constant 0 : index
    %1 = vector.load %arg2[%c0_1, %c0_2] : memref<8x1xi32, #tpu.memory_space<vmem>>, vector<8x1xi32>
    %cst = arith.constant 0.000000e+00 : f32
    %2 = vector.broadcast %cst : f32 to vector<8x32xf32>
    %cst_3 = arith.constant 0.000000e+00 : f32
    %3 = vector.broadcast %cst_3 : f32 to vector<8x32xf32>
    %c0_i32 = arith.constant 0 : i32
    %4 = arith.index_cast %c0_i32 : i32 to index
    %c0_4 = arith.constant 0 : index
    %c0_5 = arith.constant 0 : index
    %5 = vector.load %arg1[%4, %c0_4, %c0_5] : memref<10x8x128xf32, #tpu.memory_space<vmem>>, vector<1x8x128xf32>
    %6 = vector.shape_cast %5 : vector<1x8x128xf32> to vector<8x128xf32>
    %cst_6 = arith.constant dense<0.000000e+00> : vector<8x128xf32>
    %7 = tpu.matmul %2, %0, %cst_6 {dimension_numbers = #tpu.dot_dimension_numbers<[1], [0], [0], [1], [0, 0, 1, 1], [], []>} : vector<8x32xf32>, vector<32x128xf32>, vector<8x128xf32> -> vector<8x128xf32>
    %8 = arith.addf %6, %7 : vector<8x128xf32>
    %9 = vector.extract_strided_slice %8 {offsets = [0, 0], sizes = [8, 32], strides = [1, 1]} : vector<8x128xf32> to vector<8x32xf32>
    %10 = arith.negf %9 : vector<8x32xf32>
    %11 = math.exp %10 : vector<8x32xf32>
    %cst_7 = arith.constant 1.000000e+00 : f32
    %12 = vector.broadcast %cst_7 : f32 to vector<8x32xf32>
    %13 = arith.addf %12, %11 : vector<8x32xf32>
    %14 = arith.divf %12, %13 : vector<8x32xf32>
    %15 = vector.extract_strided_slice %8 {offsets = [0, 32], sizes = [8, 32], strides = [1, 1]} : vector<8x128xf32> to vector<8x32xf32>
    %16 = arith.negf %15 : vector<8x32xf32>
    %17 = math.exp %16 : vector<8x32xf32>
    %cst_8 = arith.constant 1.000000e+00 : f32
    %18 = vector.broadcast %cst_8 : f32 to vector<8x32xf32>
    %19 = arith.addf %18, %17 : vector<8x32xf32>
    %20 = arith.divf %18, %19 : vector<8x32xf32>
    %21 = vector.extract_strided_slice %8 {offsets = [0, 64], sizes = [8, 32], strides = [1, 1]} : vector<8x128xf32> to vector<8x32xf32>
    %22 = math.tanh %21 : vector<8x32xf32>
    %23 = vector.extract_strided_slice %8 {offsets = [0, 96], sizes = [8, 32], strides = [1, 1]} : vector<8x128xf32> to vector<8x32xf32>
    %24 = arith.negf %23 : vector<8x32xf32>
    %25 = math.exp %24 : vector<8x32xf32>
    %cst_9 = arith.constant 1.000000e+00 : f32
    %26 = vector.broadcast %cst_9 : f32 to vector<8x32xf32>
    %27 = arith.addf %26, %25 : vector<8x32xf32>
    %28 = arith.divf %26, %27 : vector<8x32xf32>
    %29 = arith.mulf %20, %3 : vector<8x32xf32>
    %30 = arith.mulf %14, %22 : vector<8x32xf32>
    %31 = arith.addf %29, %30 : vector<8x32xf32>
    %32 = math.tanh %31 : vector<8x32xf32>
    %33 = arith.mulf %28, %32 : vector<8x32xf32>
    %34 = vector.broadcast %c0_i32 : i32 to vector<8x1xi32>
    %35 = arith.cmpi sgt, %1, %34 : vector<8x1xi32>
    %cst_10 = arith.constant 0.000000e+00 : f32
    %36 = vector.shape_cast %35 : vector<8x1xi1> to vector<8x1xi1>
    %37 = vector.broadcast %36 : vector<8x1xi1> to vector<8x32xi1>
    %38 = vector.broadcast %cst_10 : f32 to vector<8x32xf32>
    %39 = arith.select %37, %33, %38 : vector<8x32xi1>, vector<8x32xf32>
    %40 = arith.index_cast %c0_i32 : i32 to index
    %c0_11 = arith.constant 0 : index
    %c0_12 = arith.constant 0 : index
    %41 = vector.load %arg4[%40, %c0_11, %c0_12] : memref<10x8x32xf32, #tpu.memory_space<vmem>>, vector<1x8x32xf32>
    %42 = vector.shape_cast %41 : vector<1x8x32xf32> to vector<8x32xf32>
    %43 = vector.shape_cast %39 : vector<8x32xf32> to vector<1x8x32xf32>
    tpu.vector_store %arg4[%40, %c0_11, %c0_12], %43 {strides = array<i32>} : memref<10x8x32xf32, #tpu.memory_space<vmem>>, vector<1x8x32xf32>,
    %44 = vector.shape_cast %35 : vector<8x1xi1> to vector<8x1xi1>
    %45 = vector.broadcast %44 : vector<8x1xi1> to vector<8x32xi1>
    %46 = arith.select %45, %33, %2 : vector<8x32xi1>, vector<8x32xf32>
    %47 = vector.shape_cast %35 : vector<8x1xi1> to vector<8x1xi1>
    %48 = vector.broadcast %47 : vector<8x1xi1> to vector<8x32xi1>
    %49 = arith.select %48, %31, %3 : vector<8x32xi1>, vector<8x32xf32>
    %c1_i32 = arith.constant 1 : i32
    %50 = arith.index_cast %c1_i32 : i32 to index
    %c0_13 = arith.constant 0 : index
    %c0_14 = arith.constant 0 : index
    %51 = vector.load %arg1[%50, %c0_13, %c0_14] : memref<10x8x128xf32, #tpu.memory_space<vmem>>, vector<1x8x128xf32>
    %52 = vector.shape_cast %51 : vector<1x8x128xf32> to vector<8x128xf32>
    %cst_15 = arith.constant dense<0.000000e+00> : vector<8x128xf32>
    %53 = tpu.matmul %46, %0, %cst_15 {dimension_numbers = #tpu.dot_dimension_numbers<[1], [0], [0], [1], [0, 0, 1, 1], [], []>} : vector<8x32xf32>, vector<32x128xf32>, vector<8x128xf32> -> vector<8x128xf32>
    %54 = arith.addf %52, %53 : vector<8x128xf32>
    %55 = vector.extract_strided_slice %54 {offsets = [0, 0], sizes = [8, 32], strides = [1, 1]} : vector<8x128xf32> to vector<8x32xf32>
    %56 = arith.negf %55 : vector<8x32xf32>
    %57 = math.exp %56 : vector<8x32xf32>
    %cst_16 = arith.constant 1.000000e+00 : f32
    %58 = vector.broadcast %cst_16 : f32 to vector<8x32xf32>
    %59 = arith.addf %58, %57 : vector<8x32xf32>
    %60 = arith.divf %58, %59 : vector<8x32xf32>
    %61 = vector.extract_strided_slice %54 {offsets = [0, 32], sizes = [8, 32], strides = [1, 1]} : vector<8x128xf32> to vector<8x32xf32>
    %62 = arith.negf %61 : vector<8x32xf32>
    %63 = math.exp %62 : vector<8x32xf32>
    %cst_17 = arith.constant 1.000000e+00 : f32
    %64 = vector.broadcast %cst_17 : f32 to vector<8x32xf32>
    %65 = arith.addf %64, %63 : vector<8x32xf32>
    %66 = arith.divf %64, %65 : vector<8x32xf32>
    %67 = vector.extract_strided_slice %54 {offsets = [0, 64], sizes = [8, 32], strides = [1, 1]} : vector<8x128xf32> to vector<8x32xf32>
    %68 = math.tanh %67 : vector<8x32xf32>
    %69 = vector.extract_strided_slice %54 {offsets = [0, 96], sizes = [8, 32], strides = [1, 1]} : vector<8x128xf32> to vector<8x32xf32>
    %70 = arith.negf %69 : vector<8x32xf32>
    %71 = math.exp %70 : vector<8x32xf32>
    %cst_18 = arith.constant 1.000000e+00 : f32
    %72 = vector.broadcast %cst_18 : f32 to vector<8x32xf32>
    %73 = arith.addf %72, %71 : vector<8x32xf32>
    %74 = arith.divf %72, %73 : vector<8x32xf32>
    %75 = arith.mulf %66, %49 : vector<8x32xf32>
    %76 = arith.mulf %60, %68 : vector<8x32xf32>
    %77 = arith.addf %75, %76 : vector<8x32xf32>
    %78 = math.tanh %77 : vector<8x32xf32>
    %79 = arith.mulf %74, %78 : vector<8x32xf32>
    %80 = vector.broadcast %c1_i32 : i32 to vector<8x1xi32>
    %81 = arith.cmpi sgt, %1, %80 : vector<8x1xi32>
    %cst_19 = arith.constant 0.000000e+00 : f32
    %82 = vector.shape_cast %81 : vector<8x1xi1> to vector<8x1xi1>
    %83 = vector.broadcast %82 : vector<8x1xi1> to vector<8x32xi1>
    %84 = vector.broadcast %cst_19 : f32 to vector<8x32xf32>
    %85 = arith.select %83, %79, %84 : vector<8x32xi1>, vector<8x32xf32>
    %86 = arith.index_cast %c1_i32 : i32 to index
    %c0_20 = arith.constant 0 : index
    %c0_21 = arith.constant 0 : index
    %87 = vector.load %arg4[%86, %c0_20, %c0_21] : memref<10x8x32xf32, #tpu.memory_space<vmem>>, vector<1x8x32xf32>
    %88 = vector.shape_cast %87 : vector<1x8x32xf32> to vector<8x32xf32>
    %89 = vector.shape_cast %85 : vector<8x32xf32> to vector<1x8x32xf32>
    tpu.vector_store %arg4[%86, %c0_20, %c0_21], %89 {strides = array<i32>} : memref<10x8x32xf32, #tpu.memory_space<vmem>>, vector<1x8x32xf32>,
    %90 = vector.shape_cast %81 : vector<8x1xi1> to vector<8x1xi1>
    %91 = vector.broadcast %90 : vector<8x1xi1> to vector<8x32xi1>
    %92 = arith.select %91, %79, %46 : vector<8x32xi1>, vector<8x32xf32>
    %93 = vector.shape_cast %81 : vector<8x1xi1> to vector<8x1xi1>
    %94 = vector.broadcast %93 : vector<8x1xi1> to vector<8x32xi1>
    %95 = arith.select %94, %77, %49 : vector<8x32xi1>, vector<8x32xf32>
    %c2_i32 = arith.constant 2 : i32
    %96 = arith.index_cast %c2_i32 : i32 to index
    %c0_22 = arith.constant 0 : index
    %c0_23 = arith.constant 0 : index
    %97 = vector.load %arg1[%96, %c0_22, %c0_23] : memref<10x8x128xf32, #tpu.memory_space<vmem>>, vector<1x8x128xf32>
    %98 = vector.shape_cast %97 : vector<1x8x128xf32> to vector<8x128xf32>
    %cst_24 = arith.constant dense<0.000000e+00> : vector<8x128xf32>
    %99 = tpu.matmul %92, %0, %cst_24 {dimension_numbers = #tpu.dot_dimension_numbers<[1], [0], [0], [1], [0, 0, 1, 1], [], []>} : vector<8x32xf32>, vector<32x128xf32>, vector<8x128xf32> -> vector<8x128xf32>
    %100 = arith.addf %98, %99 : vector<8x128xf32>
    %101 = vector.extract_strided_slice %100 {offsets = [0, 0], sizes = [8, 32], strides = [1, 1]} : vector<8x128xf32> to vector<8x32xf32>
    %102 = arith.negf %101 : vector<8x32xf32>
    %103 = math.exp %102 : vector<8x32xf32>
    %cst_25 = arith.constant 1.000000e+00 : f32
    %104 = vector.broadcast %cst_25 : f32 to vector<8x32xf32>
    %105 = arith.addf %104, %103 : vector<8x32xf32>
    %106 = arith.divf %104, %105 : vector<8x32xf32>
    %107 = vector.extract_strided_slice %100 {offsets = [0, 32], sizes = [8, 32], strides = [1, 1]} : vector<8x128xf32> to vector<8x32xf32>
    %108 = arith.negf %107 : vector<8x32xf32>
    %109 = math.exp %108 : vector<8x32xf32>
    %cst_26 = arith.constant 1.000000e+00 : f32
    %110 = vector.broadcast %cst_26 : f32 to vector<8x32xf32>
    %111 = arith.addf %110, %109 : vector<8x32xf32>
    %112 = arith.divf %110, %111 : vector<8x32xf32>
    %113 = vector.extract_strided_slice %100 {offsets = [0, 64], sizes = [8, 32], strides = [1, 1]} : vector<8x128xf32> to vector<8x32xf32>
    %114 = math.tanh %113 : vector<8x32xf32>
    %115 = vector.extract_strided_slice %100 {offsets = [0, 96], sizes = [8, 32], strides = [1, 1]} : vector<8x128xf32> to vector<8x32xf32>
    %116 = arith.negf %115 : vector<8x32xf32>
    %117 = math.exp %116 : vector<8x32xf32>
    %cst_27 = arith.constant 1.000000e+00 : f32
    %118 = vector.broadcast %cst_27 : f32 to vector<8x32xf32>
    %119 = arith.addf %118, %117 : vector<8x32xf32>
    %120 = arith.divf %118, %119 : vector<8x32xf32>
    %121 = arith.mulf %112, %95 : vector<8x32xf32>
    %122 = arith.mulf %106, %114 : vector<8x32xf32>
    %123 = arith.addf %121, %122 : vector<8x32xf32>
    %124 = math.tanh %123 : vector<8x32xf32>
    %125 = arith.mulf %120, %124 : vector<8x32xf32>
    %126 = vector.broadcast %c2_i32 : i32 to vector<8x1xi32>
    %127 = arith.cmpi sgt, %1, %126 : vector<8x1xi32>
    %cst_28 = arith.constant 0.000000e+00 : f32
    %128 = vector.shape_cast %127 : vector<8x1xi1> to vector<8x1xi1>
    %129 = vector.broadcast %128 : vector<8x1xi1> to vector<8x32xi1>
    %130 = vector.broadcast %cst_28 : f32 to vector<8x32xf32>
    %131 = arith.select %129, %125, %130 : vector<8x32xi1>, vector<8x32xf32>
    %132 = arith.index_cast %c2_i32 : i32 to index
    %c0_29 = arith.constant 0 : index
    %c0_30 = arith.constant 0 : index
    %133 = vector.load %arg4[%132, %c0_29, %c0_30] : memref<10x8x32xf32, #tpu.memory_space<vmem>>, vector<1x8x32xf32>
    %134 = vector.shape_cast %133 : vector<1x8x32xf32> to vector<8x32xf32>
    %135 = vector.shape_cast %131 : vector<8x32xf32> to vector<1x8x32xf32>
    tpu.vector_store %arg4[%132, %c0_29, %c0_30], %135 {strides = array<i32>} : memref<10x8x32xf32, #tpu.memory_space<vmem>>, vector<1x8x32xf32>,
    %136 = vector.shape_cast %127 : vector<8x1xi1> to vector<8x1xi1>
    %137 = vector.broadcast %136 : vector<8x1xi1> to vector<8x32xi1>
    %138 = arith.select %137, %125, %92 : vector<8x32xi1>, vector<8x32xf32>
    %139 = vector.shape_cast %127 : vector<8x1xi1> to vector<8x1xi1>
    %140 = vector.broadcast %139 : vector<8x1xi1> to vector<8x32xi1>
    %141 = arith.select %140, %123, %95 : vector<8x32xi1>, vector<8x32xf32>
    %c3_i32 = arith.constant 3 : i32
    %142 = arith.index_cast %c3_i32 : i32 to index
    %c0_31 = arith.constant 0 : index
    %c0_32 = arith.constant 0 : index
    %143 = vector.load %arg1[%142, %c0_31, %c0_32] : memref<10x8x128xf32, #tpu.memory_space<vmem>>, vector<1x8x128xf32>
    %144 = vector.shape_cast %143 : vector<1x8x128xf32> to vector<8x128xf32>
    %cst_33 = arith.constant dense<0.000000e+00> : vector<8x128xf32>
    %145 = tpu.matmul %138, %0, %cst_33 {dimension_numbers = #tpu.dot_dimension_numbers<[1], [0], [0], [1], [0, 0, 1, 1], [], []>} : vector<8x32xf32>, vector<32x128xf32>, vector<8x128xf32> -> vector<8x128xf32>
    %146 = arith.addf %144, %145 : vector<8x128xf32>
    %147 = vector.extract_strided_slice %146 {offsets = [0, 0], sizes = [8, 32], strides = [1, 1]} : vector<8x128xf32> to vector<8x32xf32>
    %148 = arith.negf %147 : vector<8x32xf32>
    %149 = math.exp %148 : vector<8x32xf32>
    %cst_34 = arith.constant 1.000000e+00 : f32
    %150 = vector.broadcast %cst_34 : f32 to vector<8x32xf32>
    %151 = arith.addf %150, %149 : vector<8x32xf32>
    %152 = arith.divf %150, %151 : vector<8x32xf32>
    %153 = vector.extract_strided_slice %146 {offsets = [0, 32], sizes = [8, 32], strides = [1, 1]} : vector<8x128xf32> to vector<8x32xf32>
    %154 = arith.negf %153 : vector<8x32xf32>
    %155 = math.exp %154 : vector<8x32xf32>
    %cst_35 = arith.constant 1.000000e+00 : f32
    %156 = vector.broadcast %cst_35 : f32 to vector<8x32xf32>
    %157 = arith.addf %156, %155 : vector<8x32xf32>
    %158 = arith.divf %156, %157 : vector<8x32xf32>
    %159 = vector.extract_strided_slice %146 {offsets = [0, 64], sizes = [8, 32], strides = [1, 1]} : vector<8x128xf32> to vector<8x32xf32>
    %160 = math.tanh %159 : vector<8x32xf32>
    %161 = vector.extract_strided_slice %146 {offsets = [0, 96], sizes = [8, 32], strides = [1, 1]} : vector<8x128xf32> to vector<8x32xf32>
    %162 = arith.negf %161 : vector<8x32xf32>
    %163 = math.exp %162 : vector<8x32xf32>
    %cst_36 = arith.constant 1.000000e+00 : f32
    %164 = vector.broadcast %cst_36 : f32 to vector<8x32xf32>
    %165 = arith.addf %164, %163 : vector<8x32xf32>
    %166 = arith.divf %164, %165 : vector<8x32xf32>
    %167 = arith.mulf %158, %141 : vector<8x32xf32>
    %168 = arith.mulf %152, %160 : vector<8x32xf32>
    %169 = arith.addf %167, %168 : vector<8x32xf32>
    %170 = math.tanh %169 : vector<8x32xf32>
    %171 = arith.mulf %166, %170 : vector<8x32xf32>
    %172 = vector.broadcast %c3_i32 : i32 to vector<8x1xi32>
    %173 = arith.cmpi sgt, %1, %172 : vector<8x1xi32>
    %cst_37 = arith.constant 0.000000e+00 : f32
    %174 = vector.shape_cast %173 : vector<8x1xi1> to vector<8x1xi1>
    %175 = vector.broadcast %174 : vector<8x1xi1> to vector<8x32xi1>
    %176 = vector.broadcast %cst_37 : f32 to vector<8x32xf32>
    %177 = arith.select %175, %171, %176 : vector<8x32xi1>, vector<8x32xf32>
    %178 = arith.index_cast %c3_i32 : i32 to index
    %c0_38 = arith.constant 0 : index
    %c0_39 = arith.constant 0 : index
    %179 = vector.load %arg4[%178, %c0_38, %c0_39] : memref<10x8x32xf32, #tpu.memory_space<vmem>>, vector<1x8x32xf32>
    %180 = vector.shape_cast %179 : vector<1x8x32xf32> to vector<8x32xf32>
    %181 = vector.shape_cast %177 : vector<8x32xf32> to vector<1x8x32xf32>
    tpu.vector_store %arg4[%178, %c0_38, %c0_39], %181 {strides = array<i32>} : memref<10x8x32xf32, #tpu.memory_space<vmem>>, vector<1x8x32xf32>,
    %182 = vector.shape_cast %173 : vector<8x1xi1> to vector<8x1xi1>
    %183 = vector.broadcast %182 : vector<8x1xi1> to vector<8x32xi1>
    %184 = arith.select %183, %171, %138 : vector<8x32xi1>, vector<8x32xf32>
    %185 = vector.shape_cast %173 : vector<8x1xi1> to vector<8x1xi1>
    %186 = vector.broadcast %185 : vector<8x1xi1> to vector<8x32xi1>
    %187 = arith.select %186, %169, %141 : vector<8x32xi1>, vector<8x32xf32>
    %c4_i32 = arith.constant 4 : i32
    %188 = arith.index_cast %c4_i32 : i32 to index
    %c0_40 = arith.constant 0 : index
    %c0_41 = arith.constant 0 : index
    %189 = vector.load %arg1[%188, %c0_40, %c0_41] : memref<10x8x128xf32, #tpu.memory_space<vmem>>, vector<1x8x128xf32>
    %190 = vector.shape_cast %189 : vector<1x8x128xf32> to vector<8x128xf32>
    %cst_42 = arith.constant dense<0.000000e+00> : vector<8x128xf32>
    %191 = tpu.matmul %184, %0, %cst_42 {dimension_numbers = #tpu.dot_dimension_numbers<[1], [0], [0], [1], [0, 0, 1, 1], [], []>} : vector<8x32xf32>, vector<32x128xf32>, vector<8x128xf32> -> vector<8x128xf32>
    %192 = arith.addf %190, %191 : vector<8x128xf32>
    %193 = vector.extract_strided_slice %192 {offsets = [0, 0], sizes = [8, 32], strides = [1, 1]} : vector<8x128xf32> to vector<8x32xf32>
    %194 = arith.negf %193 : vector<8x32xf32>
    %195 = math.exp %194 : vector<8x32xf32>
    %cst_43 = arith.constant 1.000000e+00 : f32
    %196 = vector.broadcast %cst_43 : f32 to vector<8x32xf32>
    %197 = arith.addf %196, %195 : vector<8x32xf32>
    %198 = arith.divf %196, %197 : vector<8x32xf32>
    %199 = vector.extract_strided_slice %192 {offsets = [0, 32], sizes = [8, 32], strides = [1, 1]} : vector<8x128xf32> to vector<8x32xf32>
    %200 = arith.negf %199 : vector<8x32xf32>
    %201 = math.exp %200 : vector<8x32xf32>
    %cst_44 = arith.constant 1.000000e+00 : f32
    %202 = vector.broadcast %cst_44 : f32 to vector<8x32xf32>
    %203 = arith.addf %202, %201 : vector<8x32xf32>
    %204 = arith.divf %202, %203 : vector<8x32xf32>
    %205 = vector.extract_strided_slice %192 {offsets = [0, 64], sizes = [8, 32], strides = [1, 1]} : vector<8x128xf32> to vector<8x32xf32>
    %206 = math.tanh %205 : vector<8x32xf32>
    %207 = vector.extract_strided_slice %192 {offsets = [0, 96], sizes = [8, 32], strides = [1, 1]} : vector<8x128xf32> to vector<8x32xf32>
    %208 = arith.negf %207 : vector<8x32xf32>
    %209 = math.exp %208 : vector<8x32xf32>
    %cst_45 = arith.constant 1.000000e+00 : f32
    %210 = vector.broadcast %cst_45 : f32 to vector<8x32xf32>
    %211 = arith.addf %210, %209 : vector<8x32xf32>
    %212 = arith.divf %210, %211 : vector<8x32xf32>
    %213 = arith.mulf %204, %187 : vector<8x32xf32>
    %214 = arith.mulf %198, %206 : vector<8x32xf32>
    %215 = arith.addf %213, %214 : vector<8x32xf32>
    %216 = math.tanh %215 : vector<8x32xf32>
    %217 = arith.mulf %212, %216 : vector<8x32xf32>
    %218 = vector.broadcast %c4_i32 : i32 to vector<8x1xi32>
    %219 = arith.cmpi sgt, %1, %218 : vector<8x1xi32>
    %cst_46 = arith.constant 0.000000e+00 : f32
    %220 = vector.shape_cast %219 : vector<8x1xi1> to vector<8x1xi1>
    %221 = vector.broadcast %220 : vector<8x1xi1> to vector<8x32xi1>
    %222 = vector.broadcast %cst_46 : f32 to vector<8x32xf32>
    %223 = arith.select %221, %217, %222 : vector<8x32xi1>, vector<8x32xf32>
    %224 = arith.index_cast %c4_i32 : i32 to index
    %c0_47 = arith.constant 0 : index
    %c0_48 = arith.constant 0 : index
    %225 = vector.load %arg4[%224, %c0_47, %c0_48] : memref<10x8x32xf32, #tpu.memory_space<vmem>>, vector<1x8x32xf32>
    %226 = vector.shape_cast %225 : vector<1x8x32xf32> to vector<8x32xf32>
    %227 = vector.shape_cast %223 : vector<8x32xf32> to vector<1x8x32xf32>
    tpu.vector_store %arg4[%224, %c0_47, %c0_48], %227 {strides = array<i32>} : memref<10x8x32xf32, #tpu.memory_space<vmem>>, vector<1x8x32xf32>,
    %228 = vector.shape_cast %219 : vector<8x1xi1> to vector<8x1xi1>
    %229 = vector.broadcast %228 : vector<8x1xi1> to vector<8x32xi1>
    %230 = arith.select %229, %217, %184 : vector<8x32xi1>, vector<8x32xf32>
    %231 = vector.shape_cast %219 : vector<8x1xi1> to vector<8x1xi1>
    %232 = vector.broadcast %231 : vector<8x1xi1> to vector<8x32xi1>
    %233 = arith.select %232, %215, %187 : vector<8x32xi1>, vector<8x32xf32>
    %c5_i32 = arith.constant 5 : i32
    %234 = arith.index_cast %c5_i32 : i32 to index
    %c0_49 = arith.constant 0 : index
    %c0_50 = arith.constant 0 : index
    %235 = vector.load %arg1[%234, %c0_49, %c0_50] : memref<10x8x128xf32, #tpu.memory_space<vmem>>, vector<1x8x128xf32>
    %236 = vector.shape_cast %235 : vector<1x8x128xf32> to vector<8x128xf32>
    %cst_51 = arith.constant dense<0.000000e+00> : vector<8x128xf32>
    %237 = tpu.matmul %230, %0, %cst_51 {dimension_numbers = #tpu.dot_dimension_numbers<[1], [0], [0], [1], [0, 0, 1, 1], [], []>} : vector<8x32xf32>, vector<32x128xf32>, vector<8x128xf32> -> vector<8x128xf32>
    %238 = arith.addf %236, %237 : vector<8x128xf32>
    %239 = vector.extract_strided_slice %238 {offsets = [0, 0], sizes = [8, 32], strides = [1, 1]} : vector<8x128xf32> to vector<8x32xf32>
    %240 = arith.negf %239 : vector<8x32xf32>
    %241 = math.exp %240 : vector<8x32xf32>
    %cst_52 = arith.constant 1.000000e+00 : f32
    %242 = vector.broadcast %cst_52 : f32 to vector<8x32xf32>
    %243 = arith.addf %242, %241 : vector<8x32xf32>
    %244 = arith.divf %242, %243 : vector<8x32xf32>
    %245 = vector.extract_strided_slice %238 {offsets = [0, 32], sizes = [8, 32], strides = [1, 1]} : vector<8x128xf32> to vector<8x32xf32>
    %246 = arith.negf %245 : vector<8x32xf32>
    %247 = math.exp %246 : vector<8x32xf32>
    %cst_53 = arith.constant 1.000000e+00 : f32
    %248 = vector.broadcast %cst_53 : f32 to vector<8x32xf32>
    %249 = arith.addf %248, %247 : vector<8x32xf32>
    %250 = arith.divf %248, %249 : vector<8x32xf32>
    %251 = vector.extract_strided_slice %238 {offsets = [0, 64], sizes = [8, 32], strides = [1, 1]} : vector<8x128xf32> to vector<8x32xf32>
    %252 = math.tanh %251 : vector<8x32xf32>
    %253 = vector.extract_strided_slice %238 {offsets = [0, 96], sizes = [8, 32], strides = [1, 1]} : vector<8x128xf32> to vector<8x32xf32>
    %254 = arith.negf %253 : vector<8x32xf32>
    %255 = math.exp %254 : vector<8x32xf32>
    %cst_54 = arith.constant 1.000000e+00 : f32
    %256 = vector.broadcast %cst_54 : f32 to vector<8x32xf32>
    %257 = arith.addf %256, %255 : vector<8x32xf32>
    %258 = arith.divf %256, %257 : vector<8x32xf32>
    %259 = arith.mulf %250, %233 : vector<8x32xf32>
    %260 = arith.mulf %244, %252 : vector<8x32xf32>
    %261 = arith.addf %259, %260 : vector<8x32xf32>
    %262 = math.tanh %261 : vector<8x32xf32>
    %263 = arith.mulf %258, %262 : vector<8x32xf32>
    %264 = vector.broadcast %c5_i32 : i32 to vector<8x1xi32>
    %265 = arith.cmpi sgt, %1, %264 : vector<8x1xi32>
    %cst_55 = arith.constant 0.000000e+00 : f32
    %266 = vector.shape_cast %265 : vector<8x1xi1> to vector<8x1xi1>
    %267 = vector.broadcast %266 : vector<8x1xi1> to vector<8x32xi1>
    %268 = vector.broadcast %cst_55 : f32 to vector<8x32xf32>
    %269 = arith.select %267, %263, %268 : vector<8x32xi1>, vector<8x32xf32>
    %270 = arith.index_cast %c5_i32 : i32 to index
    %c0_56 = arith.constant 0 : index
    %c0_57 = arith.constant 0 : index
    %271 = vector.load %arg4[%270, %c0_56, %c0_57] : memref<10x8x32xf32, #tpu.memory_space<vmem>>, vector<1x8x32xf32>
    %272 = vector.shape_cast %271 : vector<1x8x32xf32> to vector<8x32xf32>
    %273 = vector.shape_cast %269 : vector<8x32xf32> to vector<1x8x32xf32>
    tpu.vector_store %arg4[%270, %c0_56, %c0_57], %273 {strides = array<i32>} : memref<10x8x32xf32, #tpu.memory_space<vmem>>, vector<1x8x32xf32>,
    %274 = vector.shape_cast %265 : vector<8x1xi1> to vector<8x1xi1>
    %275 = vector.broadcast %274 : vector<8x1xi1> to vector<8x32xi1>
    %276 = arith.select %275, %263, %230 : vector<8x32xi1>, vector<8x32xf32>
    %277 = vector.shape_cast %265 : vector<8x1xi1> to vector<8x1xi1>
    %278 = vector.broadcast %277 : vector<8x1xi1> to vector<8x32xi1>
    %279 = arith.select %278, %261, %233 : vector<8x32xi1>, vector<8x32xf32>
    %c6_i32 = arith.constant 6 : i32
    %280 = arith.index_cast %c6_i32 : i32 to index
    %c0_58 = arith.constant 0 : index
    %c0_59 = arith.constant 0 : index
    %281 = vector.load %arg1[%280, %c0_58, %c0_59] : memref<10x8x128xf32, #tpu.memory_space<vmem>>, vector<1x8x128xf32>
    %282 = vector.shape_cast %281 : vector<1x8x128xf32> to vector<8x128xf32>
    %cst_60 = arith.constant dense<0.000000e+00> : vector<8x128xf32>
    %283 = tpu.matmul %276, %0, %cst_60 {dimension_numbers = #tpu.dot_dimension_numbers<[1], [0], [0], [1], [0, 0, 1, 1], [], []>} : vector<8x32xf32>, vector<32x128xf32>, vector<8x128xf32> -> vector<8x128xf32>
    %284 = arith.addf %282, %283 : vector<8x128xf32>
    %285 = vector.extract_strided_slice %284 {offsets = [0, 0], sizes = [8, 32], strides = [1, 1]} : vector<8x128xf32> to vector<8x32xf32>
    %286 = arith.negf %285 : vector<8x32xf32>
    %287 = math.exp %286 : vector<8x32xf32>
    %cst_61 = arith.constant 1.000000e+00 : f32
    %288 = vector.broadcast %cst_61 : f32 to vector<8x32xf32>
    %289 = arith.addf %288, %287 : vector<8x32xf32>
    %290 = arith.divf %288, %289 : vector<8x32xf32>
    %291 = vector.extract_strided_slice %284 {offsets = [0, 32], sizes = [8, 32], strides = [1, 1]} : vector<8x128xf32> to vector<8x32xf32>
    %292 = arith.negf %291 : vector<8x32xf32>
    %293 = math.exp %292 : vector<8x32xf32>
    %cst_62 = arith.constant 1.000000e+00 : f32
    %294 = vector.broadcast %cst_62 : f32 to vector<8x32xf32>
    %295 = arith.addf %294, %293 : vector<8x32xf32>
    %296 = arith.divf %294, %295 : vector<8x32xf32>
    %297 = vector.extract_strided_slice %284 {offsets = [0, 64], sizes = [8, 32], strides = [1, 1]} : vector<8x128xf32> to vector<8x32xf32>
    %298 = math.tanh %297 : vector<8x32xf32>
    %299 = vector.extract_strided_slice %284 {offsets = [0, 96], sizes = [8, 32], strides = [1, 1]} : vector<8x128xf32> to vector<8x32xf32>
    %300 = arith.negf %299 : vector<8x32xf32>
    %301 = math.exp %300 : vector<8x32xf32>
    %cst_63 = arith.constant 1.000000e+00 : f32
    %302 = vector.broadcast %cst_63 : f32 to vector<8x32xf32>
    %303 = arith.addf %302, %301 : vector<8x32xf32>
    %304 = arith.divf %302, %303 : vector<8x32xf32>
    %305 = arith.mulf %296, %279 : vector<8x32xf32>
    %306 = arith.mulf %290, %298 : vector<8x32xf32>
    %307 = arith.addf %305, %306 : vector<8x32xf32>
    %308 = math.tanh %307 : vector<8x32xf32>
    %309 = arith.mulf %304, %308 : vector<8x32xf32>
    %310 = vector.broadcast %c6_i32 : i32 to vector<8x1xi32>
    %311 = arith.cmpi sgt, %1, %310 : vector<8x1xi32>
    %cst_64 = arith.constant 0.000000e+00 : f32
    %312 = vector.shape_cast %311 : vector<8x1xi1> to vector<8x1xi1>
    %313 = vector.broadcast %312 : vector<8x1xi1> to vector<8x32xi1>
    %314 = vector.broadcast %cst_64 : f32 to vector<8x32xf32>
    %315 = arith.select %313, %309, %314 : vector<8x32xi1>, vector<8x32xf32>
    %316 = arith.index_cast %c6_i32 : i32 to index
    %c0_65 = arith.constant 0 : index
    %c0_66 = arith.constant 0 : index
    %317 = vector.load %arg4[%316, %c0_65, %c0_66] : memref<10x8x32xf32, #tpu.memory_space<vmem>>, vector<1x8x32xf32>
    %318 = vector.shape_cast %317 : vector<1x8x32xf32> to vector<8x32xf32>
    %319 = vector.shape_cast %315 : vector<8x32xf32> to vector<1x8x32xf32>
    tpu.vector_store %arg4[%316, %c0_65, %c0_66], %319 {strides = array<i32>} : memref<10x8x32xf32, #tpu.memory_space<vmem>>, vector<1x8x32xf32>,
    %320 = vector.shape_cast %311 : vector<8x1xi1> to vector<8x1xi1>
    %321 = vector.broadcast %320 : vector<8x1xi1> to vector<8x32xi1>
    %322 = arith.select %321, %309, %276 : vector<8x32xi1>, vector<8x32xf32>
    %323 = vector.shape_cast %311 : vector<8x1xi1> to vector<8x1xi1>
    %324 = vector.broadcast %323 : vector<8x1xi1> to vector<8x32xi1>
    %325 = arith.select %324, %307, %279 : vector<8x32xi1>, vector<8x32xf32>
    %c7_i32 = arith.constant 7 : i32
    %326 = arith.index_cast %c7_i32 : i32 to index
    %c0_67 = arith.constant 0 : index
    %c0_68 = arith.constant 0 : index
    %327 = vector.load %arg1[%326, %c0_67, %c0_68] : memref<10x8x128xf32, #tpu.memory_space<vmem>>, vector<1x8x128xf32>
    %328 = vector.shape_cast %327 : vector<1x8x128xf32> to vector<8x128xf32>
    %cst_69 = arith.constant dense<0.000000e+00> : vector<8x128xf32>
    %329 = tpu.matmul %322, %0, %cst_69 {dimension_numbers = #tpu.dot_dimension_numbers<[1], [0], [0], [1], [0, 0, 1, 1], [], []>} : vector<8x32xf32>, vector<32x128xf32>, vector<8x128xf32> -> vector<8x128xf32>
    %330 = arith.addf %328, %329 : vector<8x128xf32>
    %331 = vector.extract_strided_slice %330 {offsets = [0, 0], sizes = [8, 32], strides = [1, 1]} : vector<8x128xf32> to vector<8x32xf32>
    %332 = arith.negf %331 : vector<8x32xf32>
    %333 = math.exp %332 : vector<8x32xf32>
    %cst_70 = arith.constant 1.000000e+00 : f32
    %334 = vector.broadcast %cst_70 : f32 to vector<8x32xf32>
    %335 = arith.addf %334, %333 : vector<8x32xf32>
    %336 = arith.divf %334, %335 : vector<8x32xf32>
    %337 = vector.extract_strided_slice %330 {offsets = [0, 32], sizes = [8, 32], strides = [1, 1]} : vector<8x128xf32> to vector<8x32xf32>
    %338 = arith.negf %337 : vector<8x32xf32>
    %339 = math.exp %338 : vector<8x32xf32>
    %cst_71 = arith.constant 1.000000e+00 : f32
    %340 = vector.broadcast %cst_71 : f32 to vector<8x32xf32>
    %341 = arith.addf %340, %339 : vector<8x32xf32>
    %342 = arith.divf %340, %341 : vector<8x32xf32>
    %343 = vector.extract_strided_slice %330 {offsets = [0, 64], sizes = [8, 32], strides = [1, 1]} : vector<8x128xf32> to vector<8x32xf32>
    %344 = math.tanh %343 : vector<8x32xf32>
    %345 = vector.extract_strided_slice %330 {offsets = [0, 96], sizes = [8, 32], strides = [1, 1]} : vector<8x128xf32> to vector<8x32xf32>
    %346 = arith.negf %345 : vector<8x32xf32>
    %347 = math.exp %346 : vector<8x32xf32>
    %cst_72 = arith.constant 1.000000e+00 : f32
    %348 = vector.broadcast %cst_72 : f32 to vector<8x32xf32>
    %349 = arith.addf %348, %347 : vector<8x32xf32>
    %350 = arith.divf %348, %349 : vector<8x32xf32>
    %351 = arith.mulf %342, %325 : vector<8x32xf32>
    %352 = arith.mulf %336, %344 : vector<8x32xf32>
    %353 = arith.addf %351, %352 : vector<8x32xf32>
    %354 = math.tanh %353 : vector<8x32xf32>
    %355 = arith.mulf %350, %354 : vector<8x32xf32>
    %356 = vector.broadcast %c7_i32 : i32 to vector<8x1xi32>
    %357 = arith.cmpi sgt, %1, %356 : vector<8x1xi32>
    %cst_73 = arith.constant 0.000000e+00 : f32
    %358 = vector.shape_cast %357 : vector<8x1xi1> to vector<8x1xi1>
    %359 = vector.broadcast %358 : vector<8x1xi1> to vector<8x32xi1>
    %360 = vector.broadcast %cst_73 : f32 to vector<8x32xf32>
    %361 = arith.select %359, %355, %360 : vector<8x32xi1>, vector<8x32xf32>
    %362 = arith.index_cast %c7_i32 : i32 to index
    %c0_74 = arith.constant 0 : index
    %c0_75 = arith.constant 0 : index
    %363 = vector.load %arg4[%362, %c0_74, %c0_75] : memref<10x8x32xf32, #tpu.memory_space<vmem>>, vector<1x8x32xf32>
    %364 = vector.shape_cast %363 : vector<1x8x32xf32> to vector<8x32xf32>
    %365 = vector.shape_cast %361 : vector<8x32xf32> to vector<1x8x32xf32>
    tpu.vector_store %arg4[%362, %c0_74, %c0_75], %365 {strides = array<i32>} : memref<10x8x32xf32, #tpu.memory_space<vmem>>, vector<1x8x32xf32>,
    %366 = vector.shape_cast %357 : vector<8x1xi1> to vector<8x1xi1>
    %367 = vector.broadcast %366 : vector<8x1xi1> to vector<8x32xi1>
    %368 = arith.select %367, %355, %322 : vector<8x32xi1>, vector<8x32xf32>
    %369 = vector.shape_cast %357 : vector<8x1xi1> to vector<8x1xi1>
    %370 = vector.broadcast %369 : vector<8x1xi1> to vector<8x32xi1>
    %371 = arith.select %370, %353, %325 : vector<8x32xi1>, vector<8x32xf32>
    %c8_i32 = arith.constant 8 : i32
    %372 = arith.index_cast %c8_i32 : i32 to index
    %c0_76 = arith.constant 0 : index
    %c0_77 = arith.constant 0 : index
    %373 = vector.load %arg1[%372, %c0_76, %c0_77] : memref<10x8x128xf32, #tpu.memory_space<vmem>>, vector<1x8x128xf32>
    %374 = vector.shape_cast %373 : vector<1x8x128xf32> to vector<8x128xf32>
    %cst_78 = arith.constant dense<0.000000e+00> : vector<8x128xf32>
    %375 = tpu.matmul %368, %0, %cst_78 {dimension_numbers = #tpu.dot_dimension_numbers<[1], [0], [0], [1], [0, 0, 1, 1], [], []>} : vector<8x32xf32>, vector<32x128xf32>, vector<8x128xf32> -> vector<8x128xf32>
    %376 = arith.addf %374, %375 : vector<8x128xf32>
    %377 = vector.extract_strided_slice %376 {offsets = [0, 0], sizes = [8, 32], strides = [1, 1]} : vector<8x128xf32> to vector<8x32xf32>
    %378 = arith.negf %377 : vector<8x32xf32>
    %379 = math.exp %378 : vector<8x32xf32>
    %cst_79 = arith.constant 1.000000e+00 : f32
    %380 = vector.broadcast %cst_79 : f32 to vector<8x32xf32>
    %381 = arith.addf %380, %379 : vector<8x32xf32>
    %382 = arith.divf %380, %381 : vector<8x32xf32>
    %383 = vector.extract_strided_slice %376 {offsets = [0, 32], sizes = [8, 32], strides = [1, 1]} : vector<8x128xf32> to vector<8x32xf32>
    %384 = arith.negf %383 : vector<8x32xf32>
    %385 = math.exp %384 : vector<8x32xf32>
    %cst_80 = arith.constant 1.000000e+00 : f32
    %386 = vector.broadcast %cst_80 : f32 to vector<8x32xf32>
    %387 = arith.addf %386, %385 : vector<8x32xf32>
    %388 = arith.divf %386, %387 : vector<8x32xf32>
    %389 = vector.extract_strided_slice %376 {offsets = [0, 64], sizes = [8, 32], strides = [1, 1]} : vector<8x128xf32> to vector<8x32xf32>
    %390 = math.tanh %389 : vector<8x32xf32>
    %391 = vector.extract_strided_slice %376 {offsets = [0, 96], sizes = [8, 32], strides = [1, 1]} : vector<8x128xf32> to vector<8x32xf32>
    %392 = arith.negf %391 : vector<8x32xf32>
    %393 = math.exp %392 : vector<8x32xf32>
    %cst_81 = arith.constant 1.000000e+00 : f32
    %394 = vector.broadcast %cst_81 : f32 to vector<8x32xf32>
    %395 = arith.addf %394, %393 : vector<8x32xf32>
    %396 = arith.divf %394, %395 : vector<8x32xf32>
    %397 = arith.mulf %388, %371 : vector<8x32xf32>
    %398 = arith.mulf %382, %390 : vector<8x32xf32>
    %399 = arith.addf %397, %398 : vector<8x32xf32>
    %400 = math.tanh %399 : vector<8x32xf32>
    %401 = arith.mulf %396, %400 : vector<8x32xf32>
    %402 = vector.broadcast %c8_i32 : i32 to vector<8x1xi32>
    %403 = arith.cmpi sgt, %1, %402 : vector<8x1xi32>
    %cst_82 = arith.constant 0.000000e+00 : f32
    %404 = vector.shape_cast %403 : vector<8x1xi1> to vector<8x1xi1>
    %405 = vector.broadcast %404 : vector<8x1xi1> to vector<8x32xi1>
    %406 = vector.broadcast %cst_82 : f32 to vector<8x32xf32>
    %407 = arith.select %405, %401, %406 : vector<8x32xi1>, vector<8x32xf32>
    %408 = arith.index_cast %c8_i32 : i32 to index
    %c0_83 = arith.constant 0 : index
    %c0_84 = arith.constant 0 : index
    %409 = vector.load %arg4[%408, %c0_83, %c0_84] : memref<10x8x32xf32, #tpu.memory_space<vmem>>, vector<1x8x32xf32>
    %410 = vector.shape_cast %409 : vector<1x8x32xf32> to vector<8x32xf32>
    %411 = vector.shape_cast %407 : vector<8x32xf32> to vector<1x8x32xf32>
    tpu.vector_store %arg4[%408, %c0_83, %c0_84], %411 {strides = array<i32>} : memref<10x8x32xf32, #tpu.memory_space<vmem>>, vector<1x8x32xf32>,
    %412 = vector.shape_cast %403 : vector<8x1xi1> to vector<8x1xi1>
    %413 = vector.broadcast %412 : vector<8x1xi1> to vector<8x32xi1>
    %414 = arith.select %413, %401, %368 : vector<8x32xi1>, vector<8x32xf32>
    %415 = vector.shape_cast %403 : vector<8x1xi1> to vector<8x1xi1>
    %416 = vector.broadcast %415 : vector<8x1xi1> to vector<8x32xi1>
    %417 = arith.select %416, %399, %371 : vector<8x32xi1>, vector<8x32xf32>
    %c9_i32 = arith.constant 9 : i32
    %418 = arith.index_cast %c9_i32 : i32 to index
    %c0_85 = arith.constant 0 : index
    %c0_86 = arith.constant 0 : index
    %419 = vector.load %arg1[%418, %c0_85, %c0_86] : memref<10x8x128xf32, #tpu.memory_space<vmem>>, vector<1x8x128xf32>
    %420 = vector.shape_cast %419 : vector<1x8x128xf32> to vector<8x128xf32>
    %cst_87 = arith.constant dense<0.000000e+00> : vector<8x128xf32>
    %421 = tpu.matmul %414, %0, %cst_87 {dimension_numbers = #tpu.dot_dimension_numbers<[1], [0], [0], [1], [0, 0, 1, 1], [], []>} : vector<8x32xf32>, vector<32x128xf32>, vector<8x128xf32> -> vector<8x128xf32>
    %422 = arith.addf %420, %421 : vector<8x128xf32>
    %423 = vector.extract_strided_slice %422 {offsets = [0, 0], sizes = [8, 32], strides = [1, 1]} : vector<8x128xf32> to vector<8x32xf32>
    %424 = arith.negf %423 : vector<8x32xf32>
    %425 = math.exp %424 : vector<8x32xf32>
    %cst_88 = arith.constant 1.000000e+00 : f32
    %426 = vector.broadcast %cst_88 : f32 to vector<8x32xf32>
    %427 = arith.addf %426, %425 : vector<8x32xf32>
    %428 = arith.divf %426, %427 : vector<8x32xf32>
    %429 = vector.extract_strided_slice %422 {offsets = [0, 32], sizes = [8, 32], strides = [1, 1]} : vector<8x128xf32> to vector<8x32xf32>
    %430 = arith.negf %429 : vector<8x32xf32>
    %431 = math.exp %430 : vector<8x32xf32>
    %cst_89 = arith.constant 1.000000e+00 : f32
    %432 = vector.broadcast %cst_89 : f32 to vector<8x32xf32>
    %433 = arith.addf %432, %431 : vector<8x32xf32>
    %434 = arith.divf %432, %433 : vector<8x32xf32>
    %435 = vector.extract_strided_slice %422 {offsets = [0, 64], sizes = [8, 32], strides = [1, 1]} : vector<8x128xf32> to vector<8x32xf32>
    %436 = math.tanh %435 : vector<8x32xf32>
    %437 = vector.extract_strided_slice %422 {offsets = [0, 96], sizes = [8, 32], strides = [1, 1]} : vector<8x128xf32> to vector<8x32xf32>
    %438 = arith.negf %437 : vector<8x32xf32>
    %439 = math.exp %438 : vector<8x32xf32>
    %cst_90 = arith.constant 1.000000e+00 : f32
    %440 = vector.broadcast %cst_90 : f32 to vector<8x32xf32>
    %441 = arith.addf %440, %439 : vector<8x32xf32>
    %442 = arith.divf %440, %441 : vector<8x32xf32>
    %443 = arith.mulf %434, %417 : vector<8x32xf32>
    %444 = arith.mulf %428, %436 : vector<8x32xf32>
    %445 = arith.addf %443, %444 : vector<8x32xf32>
    %446 = math.tanh %445 : vector<8x32xf32>
    %447 = arith.mulf %442, %446 : vector<8x32xf32>
    %448 = vector.broadcast %c9_i32 : i32 to vector<8x1xi32>
    %449 = arith.cmpi sgt, %1, %448 : vector<8x1xi32>
    %cst_91 = arith.constant 0.000000e+00 : f32
    %450 = vector.shape_cast %449 : vector<8x1xi1> to vector<8x1xi1>
    %451 = vector.broadcast %450 : vector<8x1xi1> to vector<8x32xi1>
    %452 = vector.broadcast %cst_91 : f32 to vector<8x32xf32>
    %453 = arith.select %451, %447, %452 : vector<8x32xi1>, vector<8x32xf32>
    %454 = arith.index_cast %c9_i32 : i32 to index
    %c0_92 = arith.constant 0 : index
    %c0_93 = arith.constant 0 : index
    %455 = vector.load %arg4[%454, %c0_92, %c0_93] : memref<10x8x32xf32, #tpu.memory_space<vmem>>, vector<1x8x32xf32>
    %456 = vector.shape_cast %455 : vector<1x8x32xf32> to vector<8x32xf32>
    %457 = vector.shape_cast %453 : vector<8x32xf32> to vector<1x8x32xf32>
    tpu.vector_store %arg4[%454, %c0_92, %c0_93], %457 {strides = array<i32>} : memref<10x8x32xf32, #tpu.memory_space<vmem>>, vector<1x8x32xf32>,
    %458 = vector.shape_cast %449 : vector<8x1xi1> to vector<8x1xi1>
    %459 = vector.broadcast %458 : vector<8x1xi1> to vector<8x32xi1>
    %460 = arith.select %459, %447, %414 : vector<8x32xi1>, vector<8x32xf32>
    %461 = vector.shape_cast %449 : vector<8x1xi1> to vector<8x1xi1>
    %462 = vector.broadcast %461 : vector<8x1xi1> to vector<8x32xi1>
    %463 = arith.select %462, %445, %417 : vector<8x32xi1>, vector<8x32xf32>
    %c10_i32 = arith.constant 10 : i32
    %c0_94 = arith.constant 0 : index
    %c0_95 = arith.constant 0 : index
    %464 = vector.load %arg5[%c0_94, %c0_95] : memref<8x32xf32, #tpu.memory_space<vmem>>, vector<8x32xf32>
    tpu.vector_store %arg5[%c0_94, %c0_95], %460 {strides = array<i32>} : memref<8x32xf32, #tpu.memory_space<vmem>>, vector<8x32xf32>,
    return
  }
  func.func @transform_0(%arg0: i32) -> (i32, i32, i32) {
    %c0_i32 = arith.constant 0 : i32
    %c0_i32_0 = arith.constant 0 : i32
    %c0_i32_1 = arith.constant 0 : i32
    %c0_i32_2 = arith.constant 0 : i32
    return %c0_i32, %c0_i32_0, %c0_i32_1 : i32, i32, i32
  }
  func.func @transform_1(%arg0: i32) -> (i32, i32) {
    %c0_i32 = arith.constant 0 : i32
    %c0_i32_0 = arith.constant 0 : i32
    %c0_i32_1 = arith.constant 0 : i32
    return %c0_i32, %c0_i32_0 : i32, i32
  }
  func.func @transform_2(%arg0: i32) -> (i32, i32) {
    %c0_i32 = arith.constant 0 : i32
    %c0_i32_0 = arith.constant 0 : i32
    %c0_i32_1 = arith.constant 0 : i32
    return %c0_i32, %c0_i32_0 : i32, i32
  }
  func.func @transform_3(%arg0: i32) -> (i32, i32, i32) {
    %c0_i32 = arith.constant 0 : i32
    %c0_i32_0 = arith.constant 0 : i32
    %c0_i32_1 = arith.constant 0 : i32
    %c0_i32_2 = arith.constant 0 : i32
    return %c0_i32, %c0_i32_0, %c0_i32_1 : i32, i32, i32
  }
  func.func @transform_4(%arg0: i32) -> (i32, i32) {
    %c0_i32 = arith.constant 0 : i32
    %c0_i32_0 = arith.constant 0 : i32
    %c0_i32_1 = arith.constant 0 : i32
    return %c0_i32, %c0_i32_0 : i32, i32
  }
}

</mosaic_0001>

<bundles_post_ra>
// kernel: tpu_custom_call.1
= control target key start
LH: loop header
LB: loop body
LE: loop exit
PB: predicated region body
PF: predicated region fallthrough
CT: control target
= control target key end

     0   :  { %10 = vsyncpa [#allocation3], 0  ;;  %s1958_s0 = inlined_call_operand.hbm [shape: f32[10,8,128], index: 0, kind: input, shape index: {}]   ;;  %s1959_s1 = inlined_call_operand.vmem [shape: s32[8,1], index: 1, kind: input, shape index: {}]   ;;  %s1960_s2 = inlined_call_operand.hbm [shape: f32[32,128], index: 2, kind: input, shape index: {}]   ;;  %s1961_s3 = inlined_call_operand.hbm [shape: f32[10,8,32], index: 3, kind: output, shape index: {0}]   ;;  %s1962_s4 = inlined_call_operand.hbm [shape: f32[8,32], index: 4, kind: output, shape index: {1}]  }
   0x1   :  { %11 = vsyncpa [#allocation6], 0 }
   0x2   :  { %12 = vsyncpa [#allocation4], 0 }
   0x3   :  { %13 = vsyncpa [#allocation9], 0  ;;  %s1610_s15 = smov [#allocation2]  }
   0x4   :  { %s19_s16 = sshll.u32 %s1610_s15, 4  ;;  %s20_s16 = int_to_ptr.vmem [resolvable:$true] %s19_s16 }
   0x5   :  { %s1530_s17 = scalar_lea.vmem %s20_s16, 1280  ;;  %p1535_p1 = scmp.lt.s32.totalorder %s20_s16, %s20_s16 }
   0x6   :  { %p1531_p0 = scmp.ne.s32.totalorder %s20_s16, %s1530_s17  ;;  %p1536_p2 = scmp.lt.s32.totalorder %s1530_s17, %s1530_s17 }
   0x8   :  { %p1537_p3 = por %p1536_p2, %p1535_p1 }
   0xa   :  { %p1538_p4 = pnand %p1537_p3, %p1531_p0 }
   0xc   :  { %1541 = shalt.err (!%p1538_p4)
}
   0xd   :  { %s1611_s18 = smov 128   ;;  %s1612_s19 = smov 8  }
   0xe   :  { %25 = dma.hbm_to_vmem [thread:$0]  %s1958_s0, 1280, %s20_s16, [#allocation3], %s1611_s18, %s1611_s18, %s1612_s19  }
   0xf   :  { %s1613_s22 = smov [#allocation5]  }
  0x10   :  { %s33_s23 = sshll.u32 %s1613_s22, 4  ;;  %s34_s23 = int_to_ptr.vmem [resolvable:$true] %s33_s23 }
  0x11   :  { %s1550_s24 = scalar_lea.vmem %s34_s23, 512  ;;  %p1555_p6 = scmp.lt.s32.totalorder %s34_s23, %s34_s23 }
  0x12   :  { %p1551_p5 = scmp.ne.s32.totalorder %s34_s23, %s1550_s24  ;;  %p1556_p7 = scmp.lt.s32.totalorder %s1550_s24, %s1550_s24 }
  0x14   :  { %p1557_p8 = por %p1556_p7, %p1555_p6 }
  0x16   :  { %p1558_p9 = pnand %p1557_p8, %p1551_p5 }
  0x18   :  { %1561 = shalt.err (!%p1558_p9)
}
  0x19   :  { %39 = dma.hbm_to_vmem [thread:$0]  %s1960_s2, 512, %s34_s23, [#allocation6], %s1611_s18, %s1611_s18, %s1612_s19  }
  0x1a   :  { %1602 = dma.done.wait [#allocation3], 1280  }
  0x1b   :  { %1603 = vsyncadd [#allocation3], 4294966016 }
  0x1c   :  { %1604 = dma.done.wait [#allocation6], 512  }
  0x1d   :  { %1605 = vsyncadd [#allocation6], 4294966784  ;;  %v1614_v0 = vmov 0.0   ;;  %vm1615_vm0 = vmmov 0   ;;  %v1664_v1 = vld [vmem:[#allocation5 + $0x18] sm:$0xff]  ;;  %v1666_v2 = vld [vmem:[#allocation5 + $0x10] sm:$0xff] }
  0x1e   :  { %1319 = vmatprep.subr.mxu0 %v1614_v0  ;;  %1327 = vmatprep.mubr.msk.f32.mxu0 %vm1615_vm0, %v1614_v0  ;;  %v1671_v3 = vld [vmem:[#allocation5 + $0x8] sm:$0xff]  ;;  %v1677_v4 = vld [vmem:[#allocation5] sm:$0xff]  ;;  %v1702_v5 = vld [vmem:[%s1959_s1] sm:$0xff]  ;;  %v1616_v6 = vmov 0   ;;  %s1617_s27 = smov 64   ;;  %s1618_s1 = smov 32  }
  0x1f   :  { %1330 = vmatprep.subr.mxu1 %v1614_v0  ;;  %1338 = vmatprep.mubr.msk.f32.mxu1 %vm1615_vm0, %v1614_v0  ;;  %vm151_vm1 = vcmp.gt.s32.totalorder %v1702_v5, 0  ;;  %v51_v8 = vld [vmem:[#allocation2] sm:$0xff]  ;;  %vm52_vm3 = vcmask 261120   ;;  %v165_v28 = vld [vmem:[#allocation2 + $0x8] sm:$0xff]  ;;  %vm263_vm4 = vcmp.gt.s32.totalorder %v1702_v5, 1  ;;  %v279_v50 = vld [vmem:[#allocation2 + $0x10] sm:$0xff] }
  0x20   :  { %1320 = vmatpush3.msra.mxu0 %v1664_v1  ;;  %1331 = vmatpush3.msra.mxu1 %v1664_v1  ;;  %v152_v7 = vsel %vm151_vm1, 1, %v1616_v6  ;;  %v264_v33 = vsel %vm263_vm4, 1, %v1616_v6  ;;  %vm380_vm6 = vcmp.gt.s32.totalorder %v1702_v5, 2  ;;  %vm497_vm8 = vcmp.gt.s32.totalorder %v1702_v5, 3  ;;  %s1619_s28 = smov [#allocation7]   ;;  %s1620_s30 = smov [#allocation8]  }
  0x21   :  { %1321 = vmatprep.subr.mxu0 %v1614_v0  ;;  %1332 = vmatprep.subr.mxu1 %v1614_v0  ;;  %v381_v55 = vsel %vm380_vm6, 1, %v1616_v6  ;;  %vm614_vm10 = vcmp.gt.s32.totalorder %v1702_v5, 4  ;;  %vm731_vm12 = vcmp.gt.s32.totalorder %v1702_v5, 5  ;;  %vm848_vm14 = vcmp.gt.s32.totalorder %v1702_v5, 6  ;;  %s1223_s29 = sshll.u32 %s1619_s28, 4  ;;  %s1236_s5 = sshll.u32 %s1620_s30, 4  ;;  %s1224_s29 = int_to_ptr.vmem [resolvable:$true] %s1223_s29  ;;  %s1237_s5 = int_to_ptr.vmem [resolvable:$true] %s1236_s5 }
  0x22   :  { %1322 = vmatpush3.msra.mxu0 %v1666_v2  ;;  %1333 = vmatpush3.msra.mxu1 %v1666_v2  ;;  %vm965_vm1 = vcmp.gt.s32.totalorder %v1702_v5, 7  ;;  %vm1199_vm6 = vcmp.gt.s32.totalorder %v1702_v5, 9  ;;  %s1562_s6 = scalar_lea.vmem %s1224_s29, 1280  ;;  %p1567_p11 = scmp.lt.s32.totalorder %s1224_s29, %s1224_s29 }
  0x23   :  { %1323 = vmatprep.subr.mxu0 %v1614_v0  ;;  %1334 = vmatprep.subr.mxu1 %v1614_v0  ;;  %p1563_p10 = scmp.ne.s32.totalorder %s1224_s29, %s1562_s6  ;;  %p1568_p12 = scmp.lt.s32.totalorder %s1562_s6, %s1562_s6 }
  0x24   :  { %1324 = vmatpush3.msra.mxu0 %v1671_v3  ;;  %1335 = vmatpush3.msra.mxu1 %v1671_v3 }
  0x25   :  { %1325 = vmatprep.subr.mxu0 %v1614_v0  ;;  %1336 = vmatprep.subr.mxu1 %v1614_v0  ;;  %p1569_p13 = por %p1568_p12, %p1567_p11 }
  0x26   :  { %1326 = vmatpush3.msra.mxu0 %v1677_v4  ;;  %1337 = vmatpush3.msra.mxu1 %v1677_v4 }
  0x27   :  { %1328 = vmatmul.mubr.f32.vlgmr.msra.gmra.mxu0 %v1614_v0  ;;  %1341 = vmatprep.subr.mxu0 %v1614_v0  ;;  %p1570_p0 = pnand %p1569_p13, %p1563_p10 }
  0x28   :  { %1342 = vmatpush3.msra.mxu0 %v1664_v1  ;;  %1349 = vmatprep.mubr.msk.f32.mxu0 %vm1615_vm0, %v1614_v0 }
  0x29   :  { %1343 = vmatprep.subr.mxu0 %v1614_v0  ;;  %1352 = vmatprep.subr.mxu1 %v1614_v0 }
  0x2a   :  { %1344 = vmatpush3.msra.mxu0 %v1666_v2  ;;  %1440 = vset.pattern.permute.xlu1 %v1616_v6 }
  0x2b   :  { %1345 = vmatprep.subr.mxu0 %v1614_v0  ;;  %1441 = vset.pattern.permute.xlu0 %v1616_v6 }
  0x2c   :  { %1346 = vmatpush3.msra.mxu0 %v1671_v3  ;;  %154 = vperm.xlu1 %1440, %v152_v7  }
  0x2d   :  { %1347 = vmatprep.subr.mxu0 %v1614_v0 }
  0x2e   :  { %1348 = vmatpush3.msra.mxu0 %v1677_v4 }
  0x2f   :  { %1363 = vmatprep.subr.mxu0 %v1614_v0 }
  0xa7   :  { %v155_v23 = vpop.permute.xlu1 %154 }
  0xa8   :  { %vm156_vm2 = vcmp.eq.s32.totalorder %v155_v23, 1 }
  0xe7   :  { %v122_v9 = vpop.f32.mrf.mxu0 }
  0xe8   :  { %v126_v10 = vadd.f32 %v122_v9, %v51_v8 }
  0xe9   :  { %v1329_v11 = vpop.f32.mrf.mxu0 }
  0xea   :  { %1442 = vtanh.f32 %v126_v10  ;;  %v1250_v13 = vmul.f32 -1.442695, %v126_v10 }
  0xec   :  { %1444 = vpow2.f32 %v1250_v13 }
  0xf7   :  { %v1443_v12 = vpop.eup %1442 }
  0xf8   :  { %136 = vrot.lane.b32.xlu0 %v1443_v12, %s1617_s27 }
  0xf9   :  { %v1445_v14 = vpop.eup %1444 }
  0xfa   :  { %v130_v15 = vadd.f32 1.0, %v1445_v14 }
  0xfc   :  { %1446 = vrcp.f32 %v130_v15  ;;  %v396_v15 = vld [vmem:[#allocation2 + $0x18] sm:$0xff] }
 0x109   :  { %v1447_v16 = vpop.eup %1446 }
 0x10a   :  { %v134_v19 = vmul.f32 0.0, %v1447_v16 }
 0x16a   :  { %v137_v17 = vpop.permute.xlu0 %136 }
 0x16b   :  { %v139_v18 = vmul.f32 %v1447_v16, %v137_v17 }
 0x16d   :  { %141 = vrot.lane.b32.xlu0 %v139_v18, %s1618_s1 }
 0x1df   :  { %v142_v20 = vpop.permute.xlu0 %141 }
 0x1e0   :  { %v144_v21 = vadd.f32 %v142_v20, %v134_v19  ;;  %v498_v20 = vsel %vm497_vm8, 1, %v1616_v6 }
 0x1e2   :  { %1448 = vtanh.f32 %v144_v21  ;;  %v163_v40 = vsel %vm156_vm2, %v144_v21, 0.0 }
 0x1ef   :  { %v1449_v22 = vpop.eup %1448 }
 0x1f0   :  { %147 = vrot.lane.b32.xlu1 %v1449_v22, %s1617_s27 }
 0x262   :  { %v148_v24 = vpop.permute.xlu1 %147 }
 0x263   :  { %v150_v25 = vmul.f32 %v1447_v16, %v148_v24 }
 0x265   :  { %v157_v26 = vsel %vm156_vm2, %v150_v25, 0.0  ;;  %vm1082_vm2 = vcmp.gt.s32.totalorder %v1702_v5, 8 }
 0x266   :  { %159 = vrot.lane.b32.xlu0 %v157_v26, %s1618_s1 }
 0x2d8   :  { %v160_v27 = vpop.permute.xlu0 %159 }
 0x2d9   :  { %162 = vst.msk [vmem:[#allocation7] sm:$0xff] %vm52_vm3, %v160_v27  ;;  %1339 = vmatmul.mubr.msk.f32.vlgmr.msra.gmra.mxu1 %vm52_vm3, %v160_v27 }
 0x2da   :  { %1353 = vmatpush3.msra.mxu1 %v1664_v1  ;;  %1360 = vmatprep.mubr.msk.f32.mxu1 %vm1615_vm0, %v1614_v0 }
 0x2db   :  { %1354 = vmatprep.subr.mxu1 %v1614_v0 }
 0x2dc   :  { %1355 = vmatpush3.msra.mxu1 %v1666_v2 }
 0x2dd   :  { %1356 = vmatprep.subr.mxu1 %v1614_v0 }
 0x2de   :  { %1357 = vmatpush3.msra.mxu1 %v1671_v3 }
 0x2df   :  { %1358 = vmatprep.subr.mxu1 %v1614_v0 }
 0x2e0   :  { %1359 = vmatpush3.msra.mxu1 %v1677_v4 }
 0x2e1   :  { %1374 = vmatprep.subr.mxu1 %v1614_v0 }
 0x399   :  { %v234_v29 = vpop.f32.mrf.mxu1 }
 0x39a   :  { %v238_v30 = vadd.f32 %v234_v29, %v165_v28 }
 0x39b   :  { %v1340_v31 = vpop.f32.mrf.mxu1 }
 0x39c   :  { %1450 = vtanh.f32 %v238_v30  ;;  %v1252_v34 = vmul.f32 -1.442695, %v238_v30 }
 0x39e   :  { %1452 = vpow2.f32 %v1252_v34 }
 0x3a9   :  { %v1451_v32 = vpop.eup %1450 }
 0x3aa   :  { %248 = vrot.lane.b32.xlu1 %v1451_v32, %s1617_s27 }
 0x3ab   :  { %v1453_v35 = vpop.eup %1452 }
 0x3ac   :  { %v242_v36 = vadd.f32 1.0, %v1453_v35 }
 0x3ae   :  { %266 = vperm.xlu1 %1440, %v264_v33   ;;  %1454 = vrcp.f32 %v242_v36 }
 0x3bb   :  { %v1455_v37 = vpop.eup %1454 }
 0x3bc   :  { %v246_v41 = vmul.f32 %v1455_v37, %v163_v40 }
 0x41c   :  { %v249_v38 = vpop.permute.xlu1 %248 }
 0x41d   :  { %v251_v39 = vmul.f32 %v1455_v37, %v249_v38 }
 0x41f   :  { %253 = vrot.lane.b32.xlu0 %v251_v39, %s1618_s1 }
 0x429   :  { %v1731_v45 = vpop.permute.xlu1 %266 }
 0x42a   :  { %vm268_vm5 = vcmp.eq.s32.totalorder %v1731_v45, 1 }
 0x491   :  { %v254_v42 = vpop.permute.xlu0 %253 }
 0x492   :  { %v256_v43 = vadd.f32 %v254_v42, %v246_v41  ;;  %v615_v42 = vsel %vm614_vm10, 1, %v1616_v6 }
 0x494   :  { %1456 = vtanh.f32 %v256_v43  ;;  %v277_v62 = vsel %vm268_vm5, %v256_v43, %v163_v40 }
 0x4a1   :  { %v1457_v44 = vpop.eup %1456 }
 0x4a2   :  { %259 = vrot.lane.b32.xlu0 %v1457_v44, %s1617_s27 }
 0x514   :  { %v260_v46 = vpop.permute.xlu0 %259 }
 0x515   :  { %v1733_v47 = vmul.f32 %v1455_v37, %v260_v46  ;;  %v513_v37 = vld [vmem:[#allocation2 + $0x20] sm:$0xff] }
 0x517   :  { %v276_v48 = vsel %vm268_vm5, %v1733_v47, %v157_v26 }
 0x518   :  { %281 = vrot.lane.b32.xlu1 %v276_v48, %s1618_s1 }
 0x58a   :  { %v282_v49 = vpop.permute.xlu1 %281 }
 0x58b   :  { %1350 = vmatmul.mubr.msk.f32.vlgmr.msra.gmra.mxu0 %vm52_vm3, %v282_v49 }
 0x58c   :  { %1364 = vmatpush3.msra.mxu0 %v1664_v1  ;;  %1371 = vmatprep.mubr.msk.f32.mxu0 %vm1615_vm0, %v1614_v0 }
 0x58d   :  { %1365 = vmatprep.subr.mxu0 %v1614_v0 }
 0x58e   :  { %1366 = vmatpush3.msra.mxu0 %v1666_v2 }
 0x58f   :  { %1367 = vmatprep.subr.mxu0 %v1614_v0 }
 0x590   :  { %1368 = vmatpush3.msra.mxu0 %v1671_v3 }
 0x591   :  { %1369 = vmatprep.subr.mxu0 %v1614_v0 }
 0x592   :  { %1370 = vmatpush3.msra.mxu0 %v1677_v4 }
 0x593   :  { %1385 = vmatprep.subr.mxu0 %v1614_v0 }
 0x64b   :  { %v351_v51 = vpop.f32.mrf.mxu0 }
 0x64c   :  { %v355_v52 = vadd.f32 %v351_v51, %v279_v50 }
 0x64d   :  { %v1351_v53 = vpop.f32.mrf.mxu0 }
 0x64e   :  { %1458 = vtanh.f32 %v355_v52  ;;  %v1254_v56 = vmul.f32 -1.442695, %v355_v52 }
 0x650   :  { %1460 = vpow2.f32 %v1254_v56 }
 0x65b   :  { %v1459_v54 = vpop.eup %1458 }
 0x65c   :  { %365 = vrot.lane.b32.xlu0 %v1459_v54, %s1617_s27 }
 0x65d   :  { %v1461_v57 = vpop.eup %1460 }
 0x65e   :  { %v359_v58 = vadd.f32 1.0, %v1461_v57 }
 0x660   :  { %383 = vperm.xlu0 %1441, %v381_v55   ;;  %1462 = vrcp.f32 %v359_v58 }
 0x66d   :  { %v1463_v59 = vpop.eup %1462 }
 0x66e   :  { %v363_v63 = vmul.f32 %v1463_v59, %v277_v62 }
 0x6ce   :  { %v366_v60 = vpop.permute.xlu0 %365 }
 0x6cf   :  { %v368_v61 = vmul.f32 %v1463_v59, %v366_v60 }
 0x6d1   :  { %370 = vrot.lane.b32.xlu1 %v368_v61, %s1618_s1  ;;  %v630_v61 = vld [vmem:[#allocation2 + $0x28] sm:$0xff] }
 0x6db   :  { %v1758_v10 = vpop.permute.xlu0 %383 }
 0x6dc   :  { %vm385_vm7 = vcmp.eq.s32.totalorder %v1758_v10, 1 }
 0x743   :  { %v371_v7 = vpop.permute.xlu1 %370 }
 0x744   :  { %v373_v8 = vadd.f32 %v371_v7, %v363_v63 }
 0x746   :  { %1464 = vtanh.f32 %v373_v8  ;;  %v394_v27 = vsel %vm385_vm7, %v373_v8, %v277_v62 }
 0x753   :  { %v1465_v9 = vpop.eup %1464 }
 0x754   :  { %376 = vrot.lane.b32.xlu1 %v1465_v9, %s1617_s27  ;;  %v732_v9 = vsel %vm731_vm12, 1, %v1616_v6 }
 0x7c6   :  { %v377_v11 = vpop.permute.xlu1 %376 }
 0x7c7   :  { %v1760_v12 = vmul.f32 %v1463_v59, %v377_v11 }
 0x7c9   :  { %v393_v13 = vsel %vm385_vm7, %v1760_v12, %v276_v48 }
 0x7ca   :  { %398 = vrot.lane.b32.xlu1 %v393_v13, %s1618_s1 }
 0x83c   :  { %v399_v14 = vpop.permute.xlu1 %398 }
 0x83d   :  { %1361 = vmatmul.mubr.msk.f32.vlgmr.msra.gmra.mxu1 %vm52_vm3, %v399_v14 }
 0x83e   :  { %1375 = vmatpush3.msra.mxu1 %v1664_v1  ;;  %1382 = vmatprep.mubr.msk.f32.mxu1 %vm1615_vm0, %v1614_v0 }
 0x83f   :  { %1376 = vmatprep.subr.mxu1 %v1614_v0 }
 0x840   :  { %1377 = vmatpush3.msra.mxu1 %v1666_v2 }
 0x841   :  { %1378 = vmatprep.subr.mxu1 %v1614_v0 }
 0x842   :  { %1379 = vmatpush3.msra.mxu1 %v1671_v3 }
 0x843   :  { %1380 = vmatprep.subr.mxu1 %v1614_v0 }
 0x844   :  { %1381 = vmatpush3.msra.mxu1 %v1677_v4 }
 0x845   :  { %1396 = vmatprep.subr.mxu1 %v1614_v0 }
 0x8fd   :  { %v468_v16 = vpop.f32.mrf.mxu1 }
 0x8fe   :  { %v472_v17 = vadd.f32 %v468_v16, %v396_v15 }
 0x8ff   :  { %v1362_v18 = vpop.f32.mrf.mxu1 }
 0x900   :  { %1466 = vtanh.f32 %v472_v17  ;;  %v1256_v21 = vmul.f32 -1.442695, %v472_v17 }
 0x902   :  { %1468 = vpow2.f32 %v1256_v21 }
 0x90d   :  { %v1467_v19 = vpop.eup %1466 }
 0x90e   :  { %482 = vrot.lane.b32.xlu0 %v1467_v19, %s1617_s27 }
 0x90f   :  { %v1469_v22 = vpop.eup %1468 }
 0x910   :  { %v476_v23 = vadd.f32 1.0, %v1469_v22 }
 0x912   :  { %500 = vperm.xlu0 %1441, %v498_v20   ;;  %1470 = vrcp.f32 %v476_v23 }
 0x91f   :  { %v1471_v24 = vpop.eup %1470 }
 0x920   :  { %v480_v28 = vmul.f32 %v1471_v24, %v394_v27 }
 0x980   :  { %v483_v25 = vpop.permute.xlu0 %482 }
 0x981   :  { %v485_v26 = vmul.f32 %v1471_v24, %v483_v25 }
 0x983   :  { %487 = vrot.lane.b32.xlu1 %v485_v26, %s1618_s1 }
 0x98d   :  { %v1785_v32 = vpop.permute.xlu0 %500 }
 0x98e   :  { %vm502_vm9 = vcmp.eq.s32.totalorder %v1785_v32, 1 }
 0x9f5   :  { %v488_v29 = vpop.permute.xlu1 %487 }
 0x9f6   :  { %v490_v30 = vadd.f32 %v488_v29, %v480_v28  ;;  %v747_v28 = vld [vmem:[#allocation2 + $0x30] sm:$0xff] }
 0x9f8   :  { %1472 = vtanh.f32 %v490_v30  ;;  %v511_v51 = vsel %vm502_vm9, %v490_v30, %v394_v27 }
 0xa05   :  { %v1473_v31 = vpop.eup %1472 }
 0xa06   :  { %493 = vrot.lane.b32.xlu1 %v1473_v31, %s1617_s27 }
 0xa78   :  { %v494_v33 = vpop.permute.xlu1 %493 }
 0xa79   :  { %v1787_v34 = vmul.f32 %v1471_v24, %v494_v33 }
 0xa7b   :  { %v510_v35 = vsel %vm502_vm9, %v1787_v34, %v393_v13 }
 0xa7c   :  { %515 = vrot.lane.b32.xlu0 %v510_v35, %s1618_s1 }
 0xaee   :  { %v516_v36 = vpop.permute.xlu0 %515 }
 0xaef   :  { %1372 = vmatmul.mubr.msk.f32.vlgmr.msra.gmra.mxu0 %vm52_vm3, %v516_v36 }
 0xaf0   :  { %1386 = vmatpush3.msra.mxu0 %v1664_v1  ;;  %1393 = vmatprep.mubr.msk.f32.mxu0 %vm1615_vm0, %v1614_v0 }
 0xaf1   :  { %1387 = vmatprep.subr.mxu0 %v1614_v0 }
 0xaf2   :  { %1388 = vmatpush3.msra.mxu0 %v1666_v2 }
 0xaf3   :  { %1389 = vmatprep.subr.mxu0 %v1614_v0 }
 0xaf4   :  { %1390 = vmatpush3.msra.mxu0 %v1671_v3 }
 0xaf5   :  { %1391 = vmatprep.subr.mxu0 %v1614_v0 }
 0xaf6   :  { %1392 = vmatpush3.msra.mxu0 %v1677_v4 }
 0xaf7   :  { %1407 = vmatprep.subr.mxu0 %v1614_v0 }
 0xbaf   :  { %v585_v38 = vpop.f32.mrf.mxu0 }
 0xbb0   :  { %v589_v39 = vadd.f32 %v585_v38, %v513_v37 }
 0xbb1   :  { %v1373_v40 = vpop.f32.mrf.mxu0 }
 0xbb2   :  { %1474 = vtanh.f32 %v589_v39  ;;  %v1258_v43 = vmul.f32 -1.442695, %v589_v39 }
 0xbb4   :  { %1476 = vpow2.f32 %v1258_v43 }
 0xbbf   :  { %v1475_v41 = vpop.eup %1474 }
 0xbc0   :  { %599 = vrot.lane.b32.xlu1 %v1475_v41, %s1617_s27 }
 0xbc1   :  { %v1477_v44 = vpop.eup %1476 }
 0xbc2   :  { %v593_v46 = vadd.f32 1.0, %v1477_v44 }
 0xbc4   :  { %617 = vperm.xlu1 %1440, %v615_v42   ;;  %1478 = vrcp.f32 %v593_v46 }
 0xbd1   :  { %v1479_v48 = vpop.eup %1478 }
 0xbd2   :  { %v597_v52 = vmul.f32 %v1479_v48, %v511_v51 }
 0xc32   :  { %v600_v49 = vpop.permute.xlu1 %599 }
 0xc33   :  { %v602_v50 = vmul.f32 %v1479_v48, %v600_v49 }
 0xc35   :  { %604 = vrot.lane.b32.xlu0 %v602_v50, %s1618_s1 }
 0xc3f   :  { %v1812_v56 = vpop.permute.xlu1 %617 }
 0xc40   :  { %vm619_vm11 = vcmp.eq.s32.totalorder %v1812_v56, 1 }
 0xca7   :  { %v605_v53 = vpop.permute.xlu0 %604 }
 0xca8   :  { %v607_v54 = vadd.f32 %v605_v53, %v597_v52 }
 0xcaa   :  { %1480 = vtanh.f32 %v607_v54  ;;  %v628_v18 = vsel %vm619_vm11, %v607_v54, %v511_v51  ;;  %v864_v54 = vld [vmem:[#allocation2 + $0x38] sm:$0xff] }
 0xcb7   :  { %v1481_v55 = vpop.eup %1480 }
 0xcb8   :  { %610 = vrot.lane.b32.xlu0 %v1481_v55, %s1617_s27 }
 0xd2a   :  { %v611_v57 = vpop.permute.xlu0 %610 }
 0xd2b   :  { %v1814_v58 = vmul.f32 %v1479_v48, %v611_v57 }
 0xd2d   :  { %v627_v59 = vsel %vm619_vm11, %v1814_v58, %v510_v35  ;;  %v849_v35 = vsel %vm848_vm14, 1, %v1616_v6 }
 0xd2e   :  { %632 = vrot.lane.b32.xlu1 %v627_v59, %s1618_s1 }
 0xda0   :  { %v633_v60 = vpop.permute.xlu1 %632 }
 0xda1   :  { %1383 = vmatmul.mubr.msk.f32.vlgmr.msra.gmra.mxu1 %vm52_vm3, %v633_v60 }
 0xda2   :  { %1397 = vmatpush3.msra.mxu1 %v1664_v1  ;;  %1404 = vmatprep.mubr.msk.f32.mxu1 %vm1615_vm0, %v1614_v0 }
 0xda3   :  { %1398 = vmatprep.subr.mxu1 %v1614_v0 }
 0xda4   :  { %1399 = vmatpush3.msra.mxu1 %v1666_v2 }
 0xda5   :  { %1400 = vmatprep.subr.mxu1 %v1614_v0 }
 0xda6   :  { %1401 = vmatpush3.msra.mxu1 %v1671_v3 }
 0xda7   :  { %1402 = vmatprep.subr.mxu1 %v1614_v0 }
 0xda8   :  { %1403 = vmatpush3.msra.mxu1 %v1677_v4 }
 0xda9   :  { %1418 = vmatprep.subr.mxu1 %v1614_v0 }
 0xe61   :  { %v702_v62 = vpop.f32.mrf.mxu1 }
 0xe62   :  { %v706_v63 = vadd.f32 %v702_v62, %v630_v61 }
 0xe63   :  { %v1384_v7 = vpop.f32.mrf.mxu1 }
 0xe64   :  { %1482 = vtanh.f32 %v706_v63  ;;  %v1260_v11 = vmul.f32 -1.442695, %v706_v63 }
 0xe66   :  { %1484 = vpow2.f32 %v1260_v11 }
 0xe71   :  { %v1483_v8 = vpop.eup %1482 }
 0xe72   :  { %716 = vrot.lane.b32.xlu0 %v1483_v8, %s1617_s27 }
 0xe73   :  { %v1485_v13 = vpop.eup %1484 }
 0xe74   :  { %v710_v14 = vadd.f32 1.0, %v1485_v13 }
 0xe76   :  { %734 = vperm.xlu0 %1441, %v732_v9   ;;  %1486 = vrcp.f32 %v710_v14 }
 0xe83   :  { %v1487_v15 = vpop.eup %1486 }
 0xe84   :  { %v714_v19 = vmul.f32 %v1487_v15, %v628_v18 }
 0xee4   :  { %v717_v16 = vpop.permute.xlu0 %716 }
 0xee5   :  { %v719_v17 = vmul.f32 %v1487_v15, %v717_v16 }
 0xee7   :  { %721 = vrot.lane.b32.xlu1 %v719_v17, %s1618_s1 }
 0xef1   :  { %v1839_v23 = vpop.permute.xlu0 %734 }
 0xef2   :  { %vm736_vm13 = vcmp.eq.s32.totalorder %v1839_v23, 1 }
 0xf59   :  { %v722_v20 = vpop.permute.xlu1 %721 }
 0xf5a   :  { %v724_v21 = vadd.f32 %v722_v20, %v714_v19 }
 0xf5c   :  { %1488 = vtanh.f32 %v724_v21  ;;  %v745_v42 = vsel %vm736_vm13, %v724_v21, %v628_v18  ;;  %v981_v18 = vld [vmem:[#allocation2 + $0x40] sm:$0xff] }
 0xf69   :  { %v1489_v22 = vpop.eup %1488 }
 0xf6a   :  { %727 = vrot.lane.b32.xlu1 %v1489_v22, %s1617_s27 }
 0xfdc   :  { %v728_v24 = vpop.permute.xlu1 %727 }
 0xfdd   :  { %v1841_v25 = vmul.f32 %v1487_v15, %v728_v24  ;;  %v1083_v24 = vsel %vm1082_vm2, 1, %v1616_v6 }
 0xfdf   :  { %v744_v26 = vsel %vm736_vm13, %v1841_v25, %v627_v59  ;;  %v737_v5 = vsel %vm736_vm13, %v1841_v25, 0.0 }
 0xfe0   :  { %749 = vrot.lane.b32.xlu0 %v744_v26, %s1618_s1 }
0x1052   :  { %v750_v27 = vpop.permute.xlu0 %749 }
0x1053   :  { %1394 = vmatmul.mubr.msk.f32.vlgmr.msra.gmra.mxu0 %vm52_vm3, %v750_v27 }
0x1054   :  { %1408 = vmatpush3.msra.mxu0 %v1664_v1  ;;  %1415 = vmatprep.mubr.msk.f32.mxu0 %vm1615_vm0, %v1614_v0 }
0x1055   :  { %1409 = vmatprep.subr.mxu0 %v1614_v0 }
0x1056   :  { %1410 = vmatpush3.msra.mxu0 %v1666_v2 }
0x1057   :  { %1411 = vmatprep.subr.mxu0 %v1614_v0 }
0x1058   :  { %1412 = vmatpush3.msra.mxu0 %v1671_v3 }
0x1059   :  { %1413 = vmatprep.subr.mxu0 %v1614_v0 }
0x105a   :  { %1414 = vmatpush3.msra.mxu0 %v1677_v4 }
0x1113   :  { %v819_v29 = vpop.f32.mrf.mxu0 }
0x1114   :  { %v823_v30 = vadd.f32 %v819_v29, %v747_v28 }
0x1115   :  { %v1395_v31 = vpop.f32.mrf.mxu0 }
0x1116   :  { %1490 = vtanh.f32 %v823_v30  ;;  %v1262_v36 = vmul.f32 -1.442695, %v823_v30 }
0x1118   :  { %1492 = vpow2.f32 %v1262_v36 }
0x1123   :  { %v1491_v33 = vpop.eup %1490 }
0x1124   :  { %833 = vrot.lane.b32.xlu1 %v1491_v33, %s1617_s27 }
0x1125   :  { %v1493_v37 = vpop.eup %1492 }
0x1126   :  { %v827_v38 = vadd.f32 1.0, %v1493_v37 }
0x1128   :  { %851 = vperm.xlu1 %1440, %v849_v35   ;;  %1494 = vrcp.f32 %v827_v38 }
0x1135   :  { %v1495_v39 = vpop.eup %1494 }
0x1136   :  { %v831_v43 = vmul.f32 %v1495_v39, %v745_v42 }
0x1196   :  { %v834_v40 = vpop.permute.xlu1 %833 }
0x1197   :  { %v836_v41 = vmul.f32 %v1495_v39, %v834_v40 }
0x1199   :  { %838 = vrot.lane.b32.xlu0 %v836_v41, %s1618_s1 }
0x11a3   :  { %v1865_v49 = vpop.permute.xlu1 %851 }
0x11a4   :  { %vm853_vm15 = vcmp.eq.s32.totalorder %v1865_v49, 1 }
0x120b   :  { %v839_v44 = vpop.permute.xlu0 %838 }
0x120c   :  { %v841_v46 = vadd.f32 %v839_v44, %v831_v43  ;;  %v1098_v44 = vld [vmem:[#allocation2 + $0x48] sm:$0xff] }
0x120e   :  { %1496 = vtanh.f32 %v841_v46  ;;  %v862_v63 = vsel %vm853_vm15, %v841_v46, %v745_v42 }
0x121b   :  { %v1497_v48 = vpop.eup %1496 }
0x121c   :  { %844 = vrot.lane.b32.xlu0 %v1497_v48, %s1617_s27 }
0x128e   :  { %v845_v50 = vpop.permute.xlu0 %844 }
0x128f   :  { %v1867_v51 = vmul.f32 %v1495_v39, %v845_v50 }
0x1291   :  { %v861_v52 = vsel %vm853_vm15, %v1867_v51, %v744_v26 }
0x1292   :  { %866 = vrot.lane.b32.xlu1 %v861_v52, %s1618_s1 }
0x1304   :  { %v867_v53 = vpop.permute.xlu1 %866 }
0x1305   :  { %1405 = vmatmul.mubr.msk.f32.vlgmr.msra.gmra.mxu1 %vm52_vm3, %v867_v53  ;;  %v1200_v53 = vsel %vm1199_vm6, 1, %v1616_v6 }
0x1306   :  { %1419 = vmatpush3.msra.mxu1 %v1664_v1  ;;  %1426 = vmatprep.mubr.msk.f32.mxu1 %vm1615_vm0, %v1614_v0 }
0x1307   :  { %1420 = vmatprep.subr.mxu1 %v1614_v0 }
0x1308   :  { %1421 = vmatpush3.msra.mxu1 %v1666_v2  ;;  %v966_v2 = vsel %vm965_vm1, 1, %v1616_v6 }
0x1309   :  { %1422 = vmatprep.subr.mxu1 %v1614_v0 }
0x130a   :  { %1423 = vmatpush3.msra.mxu1 %v1671_v3 }
0x130b   :  { %1424 = vmatprep.subr.mxu1 %v1614_v0 }
0x130c   :  { %1425 = vmatpush3.msra.mxu1 %v1677_v4 }
0x13c5   :  { %v936_v55 = vpop.f32.mrf.mxu1 }
0x13c6   :  { %v940_v57 = vadd.f32 %v936_v55, %v864_v54  ;;  %v269_v54 = vsel %vm268_vm5, %v1733_v47, 0.0  ;;  %v503_v55 = vsel %vm502_vm9, %v1787_v34, 0.0 }
0x13c7   :  { %v1406_v59 = vpop.f32.mrf.mxu1 }
0x13c8   :  { %1498 = vtanh.f32 %v940_v57  ;;  %v1264_v60 = vmul.f32 -1.442695, %v940_v57 }
0x13ca   :  { %1500 = vpow2.f32 %v1264_v60 }
0x13d5   :  { %v1499_v1 = vpop.eup %1498 }
0x13d6   :  { %950 = vrot.lane.b32.xlu0 %v1499_v1, %s1617_s27 }
0x13d7   :  { %v1501_v3 = vpop.eup %1500 }
0x13d8   :  { %v944_v61 = vadd.f32 1.0, %v1501_v3 }
0x13da   :  { %968 = vperm.xlu0 %1441, %v966_v2   ;;  %1502 = vrcp.f32 %v944_v61 }
0x13e7   :  { %v1503_v0 = vpop.eup %1502 }
0x13e8   :  { %v948_v7 = vmul.f32 %v1503_v0, %v862_v63 }
0x1448   :  { %v951_v4 = vpop.permute.xlu0 %950 }
0x1449   :  { %v953_v62 = vmul.f32 %v1503_v0, %v951_v4 }
0x144b   :  { %955 = vrot.lane.b32.xlu1 %v953_v62, %s1618_s1 }
0x1455   :  { %v969_v13 = vpop.permute.xlu0 %968 }
0x1456   :  { %vm970_vm0 = vcmp.eq.s32.totalorder %v969_v13, 1 }
0x14bd   :  { %v956_v8 = vpop.permute.xlu1 %955 }
0x14be   :  { %v958_v9 = vadd.f32 %v956_v8, %v948_v7  ;;  %v620_v7 = vsel %vm619_vm11, %v1814_v58, 0.0  ;;  %v854_v8 = vsel %vm853_vm15, %v1867_v51, 0.0 }
0x14c0   :  { %1504 = vtanh.f32 %v958_v9  ;;  %v979_v33 = vsel %vm970_vm0, %v958_v9, %v862_v63  ;;  %v386_v63 = vsel %vm385_vm7, %v1760_v12, 0.0 }
0x14cd   :  { %v1505_v11 = vpop.eup %1504 }
0x14ce   :  { %961 = vrot.lane.b32.xlu1 %v1505_v11, %s1617_s27 }
0x1540   :  { %v962_v14 = vpop.permute.xlu1 %961 }
0x1541   :  { %v964_v15 = vmul.f32 %v1503_v0, %v962_v14 }
0x1543   :  { %v978_v16 = vsel %vm970_vm0, %v964_v15, %v861_v52  ;;  %v971_v6 = vsel %vm970_vm0, %v964_v15, 0.0 }
0x1544   :  { %983 = vrot.lane.b32.xlu0 %v978_v16, %s1618_s1 }
0x15b6   :  { %v984_v17 = vpop.permute.xlu0 %983 }
0x15b7   :  { %1416 = vmatmul.mubr.msk.f32.vlgmr.msra.gmra.mxu0 %vm52_vm3, %v984_v17 }
0x1677   :  { %v1053_v19 = vpop.f32.mrf.mxu0 }
0x1678   :  { %v1057_v20 = vadd.f32 %v1053_v19, %v981_v18 }
0x1679   :  { %v1417_v21 = vpop.f32.mrf.mxu0 }
0x167a   :  { %1506 = vtanh.f32 %v1057_v20  ;;  %v1266_v26 = vmul.f32 -1.442695, %v1057_v20 }
0x167c   :  { %1508 = vpow2.f32 %v1266_v26 }
0x1687   :  { %v1507_v22 = vpop.eup %1506 }
0x1688   :  { %1067 = vrot.lane.b32.xlu1 %v1507_v22, %s1617_s27 }
0x1689   :  { %v1509_v27 = vpop.eup %1508 }
0x168a   :  { %v1061_v28 = vadd.f32 1.0, %v1509_v27 }
0x168c   :  { %1085 = vperm.xlu1 %1440, %v1083_v24   ;;  %1510 = vrcp.f32 %v1061_v28 }
0x1699   :  { %v1511_v29 = vpop.eup %1510 }
0x169a   :  { %v1065_v35 = vmul.f32 %v1511_v29, %v979_v33 }
0x16fa   :  { %v1068_v30 = vpop.permute.xlu1 %1067 }
0x16fb   :  { %v1070_v31 = vmul.f32 %v1511_v29, %v1068_v30 }
0x16fd   :  { %1072 = vrot.lane.b32.xlu0 %v1070_v31, %s1618_s1 }
0x1707   :  { %v1086_v39 = vpop.permute.xlu1 %1085 }
0x1708   :  { %vm1087_vm4 = vcmp.eq.s32.totalorder %v1086_v39, 1 }
0x176f   :  { %v1073_v36 = vpop.permute.xlu0 %1072 }
0x1770   :  { %v1075_v37 = vadd.f32 %v1073_v36, %v1065_v35 }
0x1772   :  { %1512 = vtanh.f32 %v1075_v37  ;;  %v1096_v3 = vsel %vm1087_vm4, %v1075_v37, %v979_v33 }
0x177f   :  { %v1513_v38 = vpop.eup %1512 }
0x1780   :  { %1078 = vrot.lane.b32.xlu0 %v1513_v38, %s1617_s27 }
0x17f2   :  { %v1079_v40 = vpop.permute.xlu0 %1078 }
0x17f3   :  { %v1081_v41 = vmul.f32 %v1511_v29, %v1079_v40 }
0x17f5   :  { %v1095_v42 = vsel %vm1087_vm4, %v1081_v41, %v978_v16  ;;  %v1088_v9 = vsel %vm1087_vm4, %v1081_v41, 0.0 }
0x17f6   :  { %1100 = vrot.lane.b32.xlu1 %v1095_v42, %s1618_s1 }
0x1868   :  { %v1101_v43 = vpop.permute.xlu1 %1100 }
0x1869   :  { %1427 = vmatmul.mubr.msk.f32.vlgmr.msra.gmra.mxu1 %vm52_vm3, %v1101_v43 }
0x1929   :  { %v1170_v46 = vpop.f32.mrf.mxu1 }
0x192a   :  { %v1174_v48 = vadd.f32 %v1170_v46, %v1098_v44 }
0x192b   :  { %v1428_v50 = vpop.f32.mrf.mxu1 }
0x192c   :  { %1514 = vtanh.f32 %v1174_v48  ;;  %v1268_v45 = vmul.f32 -1.442695, %v1174_v48 }
0x192e   :  { %1516 = vpow2.f32 %v1268_v45 }
0x1939   :  { %v1515_v52 = vpop.eup %1514 }
0x193a   :  { %1184 = vrot.lane.b32.xlu0 %v1515_v52, %s1617_s27 }
0x193b   :  { %v1517_v47 = vpop.eup %1516 }
0x193c   :  { %v1178_v57 = vadd.f32 1.0, %v1517_v47 }
0x193e   :  { %1202 = vperm.xlu0 %1441, %v1200_v53   ;;  %1518 = vrcp.f32 %v1178_v57 }
0x1942   :  { %271 = vrot.lane.b32.xlu0 %v269_v54, %s1618_s1 }
0x1946   :  { %505 = vrot.lane.b32.xlu0 %v503_v55, %s1618_s1 }
0x194a   :  { %739 = vrot.lane.b32.xlu0 %v737_v5, %s1618_s1 }
0x194b   :  { %v1519_v59 = vpop.eup %1518 }
0x194c   :  { %v1182_v61 = vmul.f32 %v1519_v59, %v1096_v3 }
0x194e   :  { %973 = vrot.lane.b32.xlu0 %v971_v6, %s1618_s1 }
0x19ac   :  { %v1185_v32 = vpop.permute.xlu0 %1184 }
0x19ad   :  { %v1187_v34 = vmul.f32 %v1519_v59, %v1185_v32 }
0x19af   :  { %1189 = vrot.lane.b32.xlu1 %v1187_v34, %s1618_s1 }
0x19b9   :  { %v1203_v1 = vpop.permute.xlu0 %1202 }
0x19ba   :  { %vm1204_vm5 = vcmp.eq.s32.totalorder %v1203_v1, 1 }
0x19bd   :  { %v272_v2 = vpop.permute.xlu0 %271 }
0x19be   :  { %275 = vst.msk [vmem:[#allocation7 + $0x8] sm:$0xff] %vm52_vm3, %v272_v2 }
0x19c1   :  { %v506_v23 = vpop.permute.xlu0 %505 }
0x19c2   :  { %509 = vst.msk [vmem:[#allocation7 + $0x18] sm:$0xff] %vm52_vm3, %v506_v23 }
0x19c5   :  { %v740_v25 = vpop.permute.xlu0 %739 }
0x19c6   :  { %743 = vst.msk [vmem:[#allocation7 + $0x28] sm:$0xff] %vm52_vm3, %v740_v25 }
0x19c9   :  { %v974_v60 = vpop.permute.xlu0 %973 }
0x19ca   :  { %977 = vst.msk [vmem:[#allocation7 + $0x38] sm:$0xff] %vm52_vm3, %v974_v60 }
0x1a21   :  { %v1190_v0 = vpop.permute.xlu1 %1189 }
0x1a22   :  { %v1192_v4 = vadd.f32 %v1190_v0, %v1182_v61 }
0x1a24   :  { %1520 = vtanh.f32 %v1192_v4 }
0x1a31   :  { %v1521_v62 = vpop.eup %1520 }
0x1a32   :  { %1195 = vrot.lane.b32.xlu1 %v1521_v62, %s1617_s27 }
0x1a36   :  { %388 = vrot.lane.b32.xlu1 %v386_v63, %s1618_s1 }
0x1a3a   :  { %622 = vrot.lane.b32.xlu1 %v620_v7, %s1618_s1 }
0x1a3e   :  { %856 = vrot.lane.b32.xlu1 %v854_v8, %s1618_s1 }
0x1a42   :  { %1090 = vrot.lane.b32.xlu1 %v1088_v9, %s1618_s1 }
0x1aa4   :  { %v1196_v10 = vpop.permute.xlu1 %1195 }
0x1aa5   :  { %v1198_v12 = vmul.f32 %v1519_v59, %v1196_v10 }
0x1aa7   :  { %v1205_v11 = vsel %vm1204_vm5, %v1198_v12, 0.0  ;;  %v1212_v13 = vsel %vm1204_vm5, %v1198_v12, %v1095_v42 }
0x1aa8   :  { %1207 = vrot.lane.b32.xlu0 %v1205_v11, %s1618_s1  ;;  %v389_v56 = vpop.permute.xlu1 %388  ;;  %1214 = vrot.lane.b32.xlu1 %v1212_v13, %s1618_s1 }
0x1aa9   :  { %392 = vst.msk [vmem:[#allocation7 + $0x10] sm:$0xff] %vm52_vm3, %v389_v56 }
0x1aac   :  { %v623_v58 = vpop.permute.xlu1 %622 }
0x1aad   :  { %626 = vst.msk [vmem:[#allocation7 + $0x20] sm:$0xff] %vm52_vm3, %v623_v58 }
0x1ab0   :  { %v857_v49 = vpop.permute.xlu1 %856 }
0x1ab1   :  { %860 = vst.msk [vmem:[#allocation7 + $0x30] sm:$0xff] %vm52_vm3, %v857_v49 }
0x1ab4   :  { %v1091_v51 = vpop.permute.xlu1 %1090 }
0x1ab5   :  { %1094 = vst.msk [vmem:[#allocation7 + $0x40] sm:$0xff] %vm52_vm3, %v1091_v51 }
0x1b1a   :  { %v1208_v14 = vpop.permute.xlu0 %1207  ;;  %v1215_v15 = vpop.permute.xlu1 %1214 }
0x1b1b   :  { %1211 = vst.msk [vmem:[#allocation7 + $0x48] sm:$0xff] %vm52_vm3, %v1208_v14  ;;  %1217 = vst.msk [vmem:[#allocation8] sm:$0xff] %vm52_vm3, %v1215_v15 }
0x1b1c   :  { %1573 = shalt.err (!%p1570_p0)
}
0x1b1d   :  { %1229 = dma.vmem_to_hbm [thread:$0]  %s1224_s29, 1280, %s1961_s3, [#allocation4], %s1611_s18, %s1611_s18, %s1612_s19  }
0x1b1e   :  { %s1582_s9 = scalar_lea.vmem %s1237_s5, 128  ;;  %p1587_p2 = scmp.lt.s32.totalorder %s1237_s5, %s1237_s5 }
0x1b1f   :  { %p1583_p1 = scmp.ne.s32.totalorder %s1237_s5, %s1582_s9  ;;  %p1588_p3 = scmp.lt.s32.totalorder %s1582_s9, %s1582_s9 }
0x1b21   :  { %p1589_p4 = por %p1588_p3, %p1587_p2 }
0x1b23   :  { %p1590_p5 = pnand %p1589_p4, %p1583_p1 }
0x1b25   :  { %1593 = shalt.err (!%p1590_p5)
}
0x1b26   :  { %1239 = dma.vmem_to_hbm [thread:$0]  %s1237_s5, 128, %s1962_s4, [#allocation9]  }
0x1b27   :  { %1606 = dma.done.wait [#allocation4], 1280  }
0x1b28   :  { %1607 = vsyncadd [#allocation4], 4294966016 }
0x1b29   :  { %1608 = dma.done.wait [#allocation9], 128  }
0x1b2a   :  { %1609 = vsyncadd [#allocation9], 4294967168 }
0x1b2b   :  { %1246 = vsyncpa [#allocation3], 1 }
0x1b2c   :  { %1247 = vsyncpa [#allocation6], 1 }
0x1b2d   :  { %1248 = vsyncpa [#allocation4], 1 }
0x1b2e   :  { %1249 = vsyncpa [#allocation9], 1 }

</bundles_post_ra>
